<compile_context>
chip_gen: v5e
topology: v5e:2x2
jax: 0.10.0
libtpu: 0.0.40
codegen_flags: <defaults>
</compile_context>

<pallas_src>
import jax
import jax.numpy as jnp
import numpy as np
from jax.experimental import pallas as pl
from jax.experimental.pallas import tpu as pltpu

# ----------------------------- model dimensions -----------------------------
DIM = 4                     # action dim == normflow_ds.dim
HALF = DIM // 2             # coupling split
HIDDEN = 32                 # conditioner MLP hidden width
N_FLOWS = 2                 # coupling layers (alternating halves)

CPL = 3 * HALF + 2          # parameter-slab columns per layer (= 8 for HALF=2)
MISC_COL = N_FLOWS * CPL    # column holding [logK | logD | logsigma]
NCOL = MISC_COL + 1

BATCH = 512                 # demo batch (goes on lanes)
TB = 256                    # batch tile on lanes; grid = BATCH // TB = 2 parallel steps


# --------------------------- in-kernel coupling layer ------------------------
def _coupling(P, base, za, zb, need_jac):
    """One RealNVP coupling layer in [feature, batch] (lane-dense) layout.

    za, zb : lists of HALF rows, each of shape (1, width).
    Returns transformed b-rows and (optionally) what the analytic
    Jacobian-inverse pass needs.  All contractions are VPU broadcast-FMAs
    plus sublane reduces; nothing touches the MXU (K=2 / N=2 is far too small).
    """
    W1c = [P[:, base + k: base + k + 1] for k in range(HALF)]                    # (HIDDEN,1)
    b1c = P[:, base + HALF: base + HALF + 1]                                     # (HIDDEN,1)
    Wsc = [P[:, base + HALF + 1 + j: base + HALF + 2 + j] for j in range(HALF)]  # (HIDDEN,1)
    Wtc = [P[:, base + 2 * HALF + 1 + j: base + 2 * HALF + 2 + j] for j in range(HALF)]
    sv = base + 3 * HALF + 1
    bs = [P[j: j + 1, sv: sv + 1] for j in range(HALF)]                          # (1,1)
    bt = [P[HALF + j: HALF + j + 1, sv: sv + 1] for j in range(HALF)]            # (1,1)

    # hidden layer: HALF lane-broadcast FMAs on (HIDDEN, width), then EUP tanh
    h_pre = b1c
    for k in range(HALF):
        h_pre = h_pre + W1c[k] * za[k]
    h = jnp.tanh(h_pre)                                                          # (HIDDEN, width)

    s_rows, e_rows, yb = [], [], []
    for j in range(HALF):
        s_j = jnp.tanh(jnp.sum(Wsc[j] * h, axis=0, keepdims=True) + bs[j])       # (1, width)
        t_j = jnp.sum(Wtc[j] * h, axis=0, keepdims=True) + bt[j]                 # (1, width)
        e_j = jnp.exp(s_j)
        s_rows.append(s_j)
        e_rows.append(e_j)
        yb.append(zb[j] * e_j + t_j)

    if not need_jac:
        return yb, None
    saved = dict(one_m_h2=1.0 - h * h,
                 s=s_rows,
                 one_m_s2=[1.0 - s_j * s_j for s_j in s_rows],
                 e=e_rows,
                 zb_old=list(zb),
                 W1c=W1c, Wsc=Wsc, Wtc=Wtc)
    return yb, saved


# --------------------------------- kernel -----------------------------------
def actor_kernel(s_ref, p_ref, out_ref):
    tb = s_ref.shape[1]
    S = s_ref[...]                       # (2*DIM, tb): rows 0..DIM-1 = x, rest = x_dot
    P = p_ref[...]                       # (HIDDEN, NCOL) packed parameters

    x = [S[i:i + 1, :] for i in range(DIM)]
    xdot = [S[DIM + i:DIM + i + 1, :] for i in range(DIM)]

    # ----- forward flow y = phi(x), saving analytic-Jacobian ingredients -----
    lo, hi = x[:HALF], x[HALF:]
    saved_layers = []
    for l in range(N_FLOWS):
        base = l * CPL
        if l % 2 == 0:
            hi, svd = _coupling(P, base, lo, hi, True)
        else:
            lo, svd = _coupling(P, base, hi, lo, True)
        saved_layers.append(svd)
    y = lo + hi

    # ----- target path yt = phi(0): batch-independent -> width-1 columns -----
    zero = jnp.zeros((1, 1), S.dtype)
    tlo, thi = [zero] * HALF, [zero] * HALF
    for l in range(N_FLOWS):
        base = l * CPL
        if l % 2 == 0:
            thi, _ = _coupling(P, base, tlo, thi, False)
        else:
            tlo, _ = _coupling(P, base, thi, tlo, False)
    yt = tlo + thi

    # ----- diagonal gains K (stiffness), D (damping), sigma -------------------
    gains = jnp.exp(P[0:3 * DIM, MISC_COL:MISC_COL + 1])         # (3*DIM, 1)
    Kc, Dc, Sc = gains[:DIM], gains[DIM:2 * DIM], gains[2 * DIM:]

    # ----- g = J_phi(x)^{-1} @ ( -K * (phi(x) - phi(0)) ), matrix-free --------
    g = [-Kc[i:i + 1, :] * (y[i] - yt[i]) for i in range(DIM)]
    for l in reversed(range(N_FLOWS)):
        svd = saved_layers[l]
        if l % 2 == 0:
            ga, gb = g[:HALF], g[HALF:]
        else:
            ga, gb = g[HALF:], g[:HALF]
        # u = (1 - h^2) * (W1^T @ g_a)
        w1g = svd['W1c'][0] * ga[0]
        for k in range(1, HALF):
            w1g = w1g + svd['W1c'][k] * ga[k]
        u = svd['one_m_h2'] * w1g                                 # (HIDDEN, tb)
        new_gb = []
        for j in range(HALF):
            wsu = jnp.sum(svd['Wsc'][j] * u, axis=0, keepdims=True)
            wtu = jnp.sum(svd['Wtc'][j] * u, axis=0, keepdims=True)
            a_ga = svd['zb_old'][j] * svd['e'][j] * svd['one_m_s2'][j] * wsu + wtu
            new_gb.append((gb[j] - a_ga) * jnp.exp(-svd['s'][j]))
        g = (ga + new_gb) if l % 2 == 0 else (new_gb + ga)

    # ----- mu / sigma: single fused lane-dense store ---------------------------
    mu_rows = [g[i] - Dc[i:i + 1, :] * xdot[i] for i in range(DIM)]
    sigma_block = jnp.broadcast_to(Sc, (DIM, tb))                 # exp(logsigma) over batch
    out_ref[...] = jnp.concatenate(mu_rows + [sigma_block], axis=0)


# ------------------------------ parameter packing -----------------------------
def pack_params(flow_params, logK, logD, logsigma):
    """Pack all 15 tiny parameter tensors into one (HIDDEN, NCOL) f32 slab."""
    slab = np.zeros((HIDDEN, NCOL), np.float32)
    for l, (W1, b1, WsT, bs, WtT, bt) in enumerate(flow_params):
        base = l * CPL
        slab[:, base:base + HALF] = np.asarray(W1).T                       # W1^T columns
        slab[:, base + HALF] = np.asarray(b1).reshape(-1)                  # b1
        slab[:, base + HALF + 1:base + 2 * HALF + 1] = np.asarray(WsT).T   # Ws rows as cols
        slab[:, base + 2 * HALF + 1:base + 3 * HALF + 1] = np.asarray(WtT).T
        sv = base + 3 * HALF + 1
        slab[:HALF, sv] = np.asarray(bs).reshape(-1)
        slab[HALF:2 * HALF, sv] = np.asarray(bt).reshape(-1)
    slab[:DIM, MISC_COL] = np.asarray(logK).reshape(-1)
    slab[DIM:2 * DIM, MISC_COL] = np.asarray(logD).reshape(-1)
    slab[2 * DIM:3 * DIM, MISC_COL] = np.asarray(logsigma).reshape(-1)
    return jnp.asarray(slab)


# -------------------------------- wrapper ------------------------------------
def normflow_actor_forward(s, flow_params, logK, logD, logsigma, *, tb=TB):
    """Returns ((mu, sigma), None) exactly like the torch module."""
    B = s.shape[0]
    # layout / tiling guards (the (8,128) rule is satisfied because the feature
    # block dims equal the full array dims and tb is a multiple of 128)
    assert tb % 128 == 0, "batch tile must be lane-dense (multiple of 128)"
    assert B % tb == 0, "demo wrapper requires B to be a multiple of the batch tile"
    assert DIM % 2 == 0 and HIDDEN >= 3 * DIM and HIDDEN >= 2 * HALF

    slab = pack_params(flow_params, logK, logD, logsigma)
    sT = jnp.asarray(s, jnp.float32).T                 # (2*DIM, B): batch -> lanes

    out = pl.pallas_call(
        actor_kernel,
        grid=(B // tb,),
        in_specs=[pl.BlockSpec((2 * DIM, tb), lambda i: (0, i)),
                  pl.BlockSpec((HIDDEN, NCOL), lambda i: (0, 0))],
        out_specs=pl.BlockSpec((2 * DIM, tb), lambda i: (0, i)),
        out_shape=jax.ShapeDtypeStruct((2 * DIM, B), jnp.float32),
        compiler_params=pltpu.CompilerParams(dimension_semantics=("parallel",)),
    )(sT, slab)

    mu = out[:DIM, :].T                                # back to (B, DIM) interface
    sigma = out[DIM:, :].T
    return (mu, sigma), None


# ------------------------ pure-JAX reference (check) -------------------------
def _phi_ref(x, flow_params):
    y = x
    for l in range(N_FLOWS):
        W1, b1, WsT, bs, WtT, bt = flow_params[l]
        if l % 2 == 0:
            ya, yb = y[:, :HALF], y[:, HALF:]
        else:
            ya, yb = y[:, HALF:], y[:, :HALF]
        h = jnp.tanh(ya @ W1 + b1)
        s_ = jnp.tanh(h @ WsT.T + bs)
        t_ = h @ WtT.T + bt
        yb = yb * jnp.exp(s_) + t_
        y = jnp.concatenate([ya, yb], 1) if l % 2 == 0 else jnp.concatenate([yb, ya], 1)
    return y


def _ref_forward(s, flow_params, logK, logD, logsigma):
    x, xdot = s[:, :DIM], s[:, DIM:]
    y = _phi_ref(x, flow_params)
    yt = _phi_ref(jnp.zeros_like(x), flow_params)
    J = jax.vmap(jax.jacfwd(lambda xx: _phi_ref(xx[None, :], flow_params)[0]))(x)
    f = -jnp.exp(logK) * (y - yt)
    g = jnp.linalg.solve(J, f[..., None])[..., 0]
    mu = g - jnp.exp(logD) * xdot
    sigma = jnp.exp(logsigma) + jnp.zeros_like(mu)
    return mu, sigma


# -------------------------------- init / main --------------------------------
def init_params(key):
    flow_params = []
    for _ in range(N_FLOWS):
        key, k0, k1, k2, k3, k4, k5 = jax.random.split(key, 7)
        W1 = 0.3 * jax.random.normal(k0, (HALF, HIDDEN), jnp.float32)
        b1 = 0.1 * jax.random.normal(k1, (1, HIDDEN), jnp.float32)
        WsT = 0.3 * jax.random.normal(k2, (HALF, HIDDEN), jnp.float32)
        bs = 0.1 * jax.random.normal(k3, (1, HALF), jnp.float32)
        WtT = 0.3 * jax.random.normal(k4, (HALF, HIDDEN), jnp.float32)
        bt = 0.1 * jax.random.normal(k5, (1, HALF), jnp.float32)
        flow_params.append((W1, b1, WsT, bs, WtT, bt))
    logK = jnp.full((1, DIM), jnp.log(2.0), jnp.float32)     # stiffness diag
    logD = jnp.zeros((1, DIM), jnp.float32)                  # damping diag = 1
    logsigma = jnp.zeros((1, DIM), jnp.float32)              # nn.Parameter(torch.zeros(...))
    return flow_params, logK, logD, logsigma


if __name__ == "__main__":
    key = jax.random.PRNGKey(0)
    kp, ks = jax.random.split(key)
    flow_params, logK, logD, logsigma = init_params(kp)

    # observation = [x (DIM), x_dot (DIM)] -> shape (BATCH, 2*DIM)
    s = jax.random.normal(ks, (BATCH, 2 * DIM), jnp.float32)

    (mu, sigma), state = normflow_actor_forward(s, flow_params, logK, logD, logsigma)
    mu = jax.block_until_ready(mu)
    sigma = jax.block_until_ready(sigma)

    mu_ref, sigma_ref = _ref_forward(s, flow_params, logK, logD, logsigma)
    assert mu.shape == (BATCH, DIM) and sigma.shape == (BATCH, DIM)
    assert np.allclose(np.asarray(mu), np.asarray(mu_ref), rtol=2e-3, atol=2e-3), "mu mismatch"
    assert np.allclose(np.asarray(sigma), np.asarray(sigma_ref), rtol=1e-5, atol=1e-5), "sigma mismatch"
    assert state is None

    print("KERNEL_OK")
</pallas_src>

<mosaic_0001>
module attributes {stable_mosaic.version = 11 : i64} {
  func.func @actor_kernel(%arg0: i32, %arg1: memref<8x256xf32, #tpu.memory_space<vmem>>, %arg2: memref<32x17xf32, #tpu.memory_space<vmem>>, %arg3: memref<8x256xf32, #tpu.memory_space<vmem>>) attributes {dimension_semantics = [#tpu.dimension_semantics<parallel>], iteration_bounds = array<i64: 2>, scalar_prefetch = 0 : i64, scratch_operands = 0 : i64, tpu.core_type = #tpu.core_type<tc>, window_params = [{transform_indices = @transform_0, window_bounds = array<i64: 8, 256>}, {pipeline_mode = #tpu.pipeline_mode<synchronous>, transform_indices = @transform_1, window_bounds = array<i64: 32, 17>}, {transform_indices = @transform_2, window_bounds = array<i64: 8, 256>}]} {
    %c0 = arith.constant 0 : index
    %c0_0 = arith.constant 0 : index
    %0 = vector.load %arg1[%c0, %c0_0] : memref<8x256xf32, #tpu.memory_space<vmem>>, vector<8x256xf32>
    %c0_1 = arith.constant 0 : index
    %c0_2 = arith.constant 0 : index
    %1 = vector.load %arg2[%c0_1, %c0_2] : memref<32x17xf32, #tpu.memory_space<vmem>>, vector<32x17xf32>
    %2 = vector.extract_strided_slice %0 {offsets = [0, 0], sizes = [1, 256], strides = [1, 1]} : vector<8x256xf32> to vector<1x256xf32>
    %3 = vector.extract_strided_slice %0 {offsets = [1, 0], sizes = [1, 256], strides = [1, 1]} : vector<8x256xf32> to vector<1x256xf32>
    %4 = vector.extract_strided_slice %0 {offsets = [2, 0], sizes = [1, 256], strides = [1, 1]} : vector<8x256xf32> to vector<1x256xf32>
    %5 = vector.extract_strided_slice %0 {offsets = [3, 0], sizes = [1, 256], strides = [1, 1]} : vector<8x256xf32> to vector<1x256xf32>
    %6 = vector.extract_strided_slice %0 {offsets = [4, 0], sizes = [1, 256], strides = [1, 1]} : vector<8x256xf32> to vector<1x256xf32>
    %7 = vector.extract_strided_slice %0 {offsets = [5, 0], sizes = [1, 256], strides = [1, 1]} : vector<8x256xf32> to vector<1x256xf32>
    %8 = vector.extract_strided_slice %0 {offsets = [6, 0], sizes = [1, 256], strides = [1, 1]} : vector<8x256xf32> to vector<1x256xf32>
    %9 = vector.extract_strided_slice %0 {offsets = [7, 0], sizes = [1, 256], strides = [1, 1]} : vector<8x256xf32> to vector<1x256xf32>
    %10 = vector.extract_strided_slice %1 {offsets = [0, 0], sizes = [32, 1], strides = [1, 1]} : vector<32x17xf32> to vector<32x1xf32>
    %11 = vector.extract_strided_slice %1 {offsets = [0, 1], sizes = [32, 1], strides = [1, 1]} : vector<32x17xf32> to vector<32x1xf32>
    %12 = vector.extract_strided_slice %1 {offsets = [0, 2], sizes = [32, 1], strides = [1, 1]} : vector<32x17xf32> to vector<32x1xf32>
    %13 = vector.extract_strided_slice %1 {offsets = [0, 3], sizes = [32, 1], strides = [1, 1]} : vector<32x17xf32> to vector<32x1xf32>
    %14 = vector.extract_strided_slice %1 {offsets = [0, 4], sizes = [32, 1], strides = [1, 1]} : vector<32x17xf32> to vector<32x1xf32>
    %15 = vector.extract_strided_slice %1 {offsets = [0, 5], sizes = [32, 1], strides = [1, 1]} : vector<32x17xf32> to vector<32x1xf32>
    %16 = vector.extract_strided_slice %1 {offsets = [0, 6], sizes = [32, 1], strides = [1, 1]} : vector<32x17xf32> to vector<32x1xf32>
    %17 = vector.extract_strided_slice %1 {offsets = [0, 7], sizes = [1, 1], strides = [1, 1]} : vector<32x17xf32> to vector<1x1xf32>
    %18 = vector.extract_strided_slice %1 {offsets = [1, 7], sizes = [1, 1], strides = [1, 1]} : vector<32x17xf32> to vector<1x1xf32>
    %19 = vector.extract_strided_slice %1 {offsets = [2, 7], sizes = [1, 1], strides = [1, 1]} : vector<32x17xf32> to vector<1x1xf32>
    %20 = vector.extract_strided_slice %1 {offsets = [3, 7], sizes = [1, 1], strides = [1, 1]} : vector<32x17xf32> to vector<1x1xf32>
    %21 = vector.broadcast %10 : vector<32x1xf32> to vector<32x256xf32>
    %22 = vector.broadcast %2 : vector<1x256xf32> to vector<32x256xf32>
    %23 = arith.mulf %21, %22 : vector<32x256xf32>
    %24 = vector.broadcast %12 : vector<32x1xf32> to vector<32x256xf32>
    %25 = arith.addf %24, %23 : vector<32x256xf32>
    %26 = vector.broadcast %11 : vector<32x1xf32> to vector<32x256xf32>
    %27 = vector.broadcast %3 : vector<1x256xf32> to vector<32x256xf32>
    %28 = arith.mulf %26, %27 : vector<32x256xf32>
    %29 = arith.addf %25, %28 : vector<32x256xf32>
    %30 = math.tanh %29 : vector<32x256xf32>
    %31 = vector.broadcast %13 : vector<32x1xf32> to vector<32x256xf32>
    %32 = arith.mulf %31, %30 : vector<32x256xf32>
    %cst = arith.constant dense<0.000000e+00> : vector<256xf32>
    %33 = vector.multi_reduction <add>, %32, %cst [0] : vector<32x256xf32> to vector<256xf32>
    %34 = vector.shape_cast %33 : vector<256xf32> to vector<1x256xf32>
    %35 = vector.broadcast %17 : vector<1x1xf32> to vector<1x256xf32>
    %36 = arith.addf %34, %35 : vector<1x256xf32>
    %37 = math.tanh %36 : vector<1x256xf32>
    %38 = vector.broadcast %15 : vector<32x1xf32> to vector<32x256xf32>
    %39 = arith.mulf %38, %30 : vector<32x256xf32>
    %cst_3 = arith.constant dense<0.000000e+00> : vector<256xf32>
    %40 = vector.multi_reduction <add>, %39, %cst_3 [0] : vector<32x256xf32> to vector<256xf32>
    %41 = vector.shape_cast %40 : vector<256xf32> to vector<1x256xf32>
    %42 = vector.broadcast %19 : vector<1x1xf32> to vector<1x256xf32>
    %43 = arith.addf %41, %42 : vector<1x256xf32>
    %44 = math.exp %37 : vector<1x256xf32>
    %45 = arith.mulf %4, %44 : vector<1x256xf32>
    %46 = arith.addf %45, %43 : vector<1x256xf32>
    %47 = vector.broadcast %14 : vector<32x1xf32> to vector<32x256xf32>
    %48 = arith.mulf %47, %30 : vector<32x256xf32>
    %cst_4 = arith.constant dense<0.000000e+00> : vector<256xf32>
    %49 = vector.multi_reduction <add>, %48, %cst_4 [0] : vector<32x256xf32> to vector<256xf32>
    %50 = vector.shape_cast %49 : vector<256xf32> to vector<1x256xf32>
    %51 = vector.broadcast %18 : vector<1x1xf32> to vector<1x256xf32>
    %52 = arith.addf %50, %51 : vector<1x256xf32>
    %53 = math.tanh %52 : vector<1x256xf32>
    %54 = vector.broadcast %16 : vector<32x1xf32> to vector<32x256xf32>
    %55 = arith.mulf %54, %30 : vector<32x256xf32>
    %cst_5 = arith.constant dense<0.000000e+00> : vector<256xf32>
    %56 = vector.multi_reduction <add>, %55, %cst_5 [0] : vector<32x256xf32> to vector<256xf32>
    %57 = vector.shape_cast %56 : vector<256xf32> to vector<1x256xf32>
    %58 = vector.broadcast %20 : vector<1x1xf32> to vector<1x256xf32>
    %59 = arith.addf %57, %58 : vector<1x256xf32>
    %60 = math.exp %53 : vector<1x256xf32>
    %61 = arith.mulf %5, %60 : vector<1x256xf32>
    %62 = arith.addf %61, %59 : vector<1x256xf32>
    %63 = arith.mulf %30, %30 : vector<32x256xf32>
    %cst_6 = arith.constant 1.000000e+00 : f32
    %64 = vector.broadcast %cst_6 : f32 to vector<32x256xf32>
    %65 = arith.subf %64, %63 : vector<32x256xf32>
    %66 = arith.mulf %37, %37 : vector<1x256xf32>
    %cst_7 = arith.constant 1.000000e+00 : f32
    %67 = vector.broadcast %cst_7 : f32 to vector<1x256xf32>
    %68 = arith.subf %67, %66 : vector<1x256xf32>
    %69 = arith.mulf %53, %53 : vector<1x256xf32>
    %cst_8 = arith.constant 1.000000e+00 : f32
    %70 = vector.broadcast %cst_8 : f32 to vector<1x256xf32>
    %71 = arith.subf %70, %69 : vector<1x256xf32>
    %72 = vector.extract_strided_slice %1 {offsets = [0, 8], sizes = [32, 1], strides = [1, 1]} : vector<32x17xf32> to vector<32x1xf32>
    %73 = vector.extract_strided_slice %1 {offsets = [0, 9], sizes = [32, 1], strides = [1, 1]} : vector<32x17xf32> to vector<32x1xf32>
    %74 = vector.extract_strided_slice %1 {offsets = [0, 10], sizes = [32, 1], strides = [1, 1]} : vector<32x17xf32> to vector<32x1xf32>
    %75 = vector.extract_strided_slice %1 {offsets = [0, 11], sizes = [32, 1], strides = [1, 1]} : vector<32x17xf32> to vector<32x1xf32>
    %76 = vector.extract_strided_slice %1 {offsets = [0, 12], sizes = [32, 1], strides = [1, 1]} : vector<32x17xf32> to vector<32x1xf32>
    %77 = vector.extract_strided_slice %1 {offsets = [0, 13], sizes = [32, 1], strides = [1, 1]} : vector<32x17xf32> to vector<32x1xf32>
    %78 = vector.extract_strided_slice %1 {offsets = [0, 14], sizes = [32, 1], strides = [1, 1]} : vector<32x17xf32> to vector<32x1xf32>
    %79 = vector.extract_strided_slice %1 {offsets = [0, 15], sizes = [1, 1], strides = [1, 1]} : vector<32x17xf32> to vector<1x1xf32>
    %80 = vector.extract_strided_slice %1 {offsets = [1, 15], sizes = [1, 1], strides = [1, 1]} : vector<32x17xf32> to vector<1x1xf32>
    %81 = vector.extract_strided_slice %1 {offsets = [2, 15], sizes = [1, 1], strides = [1, 1]} : vector<32x17xf32> to vector<1x1xf32>
    %82 = vector.extract_strided_slice %1 {offsets = [3, 15], sizes = [1, 1], strides = [1, 1]} : vector<32x17xf32> to vector<1x1xf32>
    %83 = vector.broadcast %72 : vector<32x1xf32> to vector<32x256xf32>
    %84 = vector.broadcast %46 : vector<1x256xf32> to vector<32x256xf32>
    %85 = arith.mulf %83, %84 : vector<32x256xf32>
    %86 = vector.broadcast %74 : vector<32x1xf32> to vector<32x256xf32>
    %87 = arith.addf %86, %85 : vector<32x256xf32>
    %88 = vector.broadcast %73 : vector<32x1xf32> to vector<32x256xf32>
    %89 = vector.broadcast %62 : vector<1x256xf32> to vector<32x256xf32>
    %90 = arith.mulf %88, %89 : vector<32x256xf32>
    %91 = arith.addf %87, %90 : vector<32x256xf32>
    %92 = math.tanh %91 : vector<32x256xf32>
    %93 = vector.broadcast %75 : vector<32x1xf32> to vector<32x256xf32>
    %94 = arith.mulf %93, %92 : vector<32x256xf32>
    %cst_9 = arith.constant dense<0.000000e+00> : vector<256xf32>
    %95 = vector.multi_reduction <add>, %94, %cst_9 [0] : vector<32x256xf32> to vector<256xf32>
    %96 = vector.shape_cast %95 : vector<256xf32> to vector<1x256xf32>
    %97 = vector.broadcast %79 : vector<1x1xf32> to vector<1x256xf32>
    %98 = arith.addf %96, %97 : vector<1x256xf32>
    %99 = math.tanh %98 : vector<1x256xf32>
    %100 = vector.broadcast %77 : vector<32x1xf32> to vector<32x256xf32>
    %101 = arith.mulf %100, %92 : vector<32x256xf32>
    %cst_10 = arith.constant dense<0.000000e+00> : vector<256xf32>
    %102 = vector.multi_reduction <add>, %101, %cst_10 [0] : vector<32x256xf32> to vector<256xf32>
    %103 = vector.shape_cast %102 : vector<256xf32> to vector<1x256xf32>
    %104 = vector.broadcast %81 : vector<1x1xf32> to vector<1x256xf32>
    %105 = arith.addf %103, %104 : vector<1x256xf32>
    %106 = math.exp %99 : vector<1x256xf32>
    %107 = arith.mulf %2, %106 : vector<1x256xf32>
    %108 = arith.addf %107, %105 : vector<1x256xf32>
    %109 = vector.broadcast %76 : vector<32x1xf32> to vector<32x256xf32>
    %110 = arith.mulf %109, %92 : vector<32x256xf32>
    %cst_11 = arith.constant dense<0.000000e+00> : vector<256xf32>
    %111 = vector.multi_reduction <add>, %110, %cst_11 [0] : vector<32x256xf32> to vector<256xf32>
    %112 = vector.shape_cast %111 : vector<256xf32> to vector<1x256xf32>
    %113 = vector.broadcast %80 : vector<1x1xf32> to vector<1x256xf32>
    %114 = arith.addf %112, %113 : vector<1x256xf32>
    %115 = math.tanh %114 : vector<1x256xf32>
    %116 = vector.broadcast %78 : vector<32x1xf32> to vector<32x256xf32>
    %117 = arith.mulf %116, %92 : vector<32x256xf32>
    %cst_12 = arith.constant dense<0.000000e+00> : vector<256xf32>
    %118 = vector.multi_reduction <add>, %117, %cst_12 [0] : vector<32x256xf32> to vector<256xf32>
    %119 = vector.shape_cast %118 : vector<256xf32> to vector<1x256xf32>
    %120 = vector.broadcast %82 : vector<1x1xf32> to vector<1x256xf32>
    %121 = arith.addf %119, %120 : vector<1x256xf32>
    %122 = math.exp %115 : vector<1x256xf32>
    %123 = arith.mulf %3, %122 : vector<1x256xf32>
    %124 = arith.addf %123, %121 : vector<1x256xf32>
    %125 = arith.mulf %92, %92 : vector<32x256xf32>
    %cst_13 = arith.constant 1.000000e+00 : f32
    %126 = vector.broadcast %cst_13 : f32 to vector<32x256xf32>
    %127 = arith.subf %126, %125 : vector<32x256xf32>
    %128 = arith.mulf %99, %99 : vector<1x256xf32>
    %cst_14 = arith.constant 1.000000e+00 : f32
    %129 = vector.broadcast %cst_14 : f32 to vector<1x256xf32>
    %130 = arith.subf %129, %128 : vector<1x256xf32>
    %131 = arith.mulf %115, %115 : vector<1x256xf32>
    %cst_15 = arith.constant 1.000000e+00 : f32
    %132 = vector.broadcast %cst_15 : f32 to vector<1x256xf32>
    %133 = arith.subf %132, %131 : vector<1x256xf32>
    %cst_16 = arith.constant 0.000000e+00 : f32
    %134 = vector.broadcast %cst_16 : f32 to vector<1x1xf32>
    %135 = vector.extract_strided_slice %1 {offsets = [0, 0], sizes = [32, 1], strides = [1, 1]} : vector<32x17xf32> to vector<32x1xf32>
    %136 = vector.extract_strided_slice %1 {offsets = [0, 1], sizes = [32, 1], strides = [1, 1]} : vector<32x17xf32> to vector<32x1xf32>
    %137 = vector.extract_strided_slice %1 {offsets = [0, 2], sizes = [32, 1], strides = [1, 1]} : vector<32x17xf32> to vector<32x1xf32>
    %138 = vector.extract_strided_slice %1 {offsets = [0, 3], sizes = [32, 1], strides = [1, 1]} : vector<32x17xf32> to vector<32x1xf32>
    %139 = vector.extract_strided_slice %1 {offsets = [0, 4], sizes = [32, 1], strides = [1, 1]} : vector<32x17xf32> to vector<32x1xf32>
    %140 = vector.extract_strided_slice %1 {offsets = [0, 5], sizes = [32, 1], strides = [1, 1]} : vector<32x17xf32> to vector<32x1xf32>
    %141 = vector.extract_strided_slice %1 {offsets = [0, 6], sizes = [32, 1], strides = [1, 1]} : vector<32x17xf32> to vector<32x1xf32>
    %142 = vector.extract_strided_slice %1 {offsets = [0, 7], sizes = [1, 1], strides = [1, 1]} : vector<32x17xf32> to vector<1x1xf32>
    %143 = vector.extract_strided_slice %1 {offsets = [1, 7], sizes = [1, 1], strides = [1, 1]} : vector<32x17xf32> to vector<1x1xf32>
    %144 = vector.extract_strided_slice %1 {offsets = [2, 7], sizes = [1, 1], strides = [1, 1]} : vector<32x17xf32> to vector<1x1xf32>
    %145 = vector.extract_strided_slice %1 {offsets = [3, 7], sizes = [1, 1], strides = [1, 1]} : vector<32x17xf32> to vector<1x1xf32>
    %146 = vector.broadcast %134 : vector<1x1xf32> to vector<32x1xf32>
    %147 = arith.mulf %135, %146 : vector<32x1xf32>
    %148 = arith.addf %137, %147 : vector<32x1xf32>
    %149 = vector.broadcast %134 : vector<1x1xf32> to vector<32x1xf32>
    %150 = arith.mulf %136, %149 : vector<32x1xf32>
    %151 = arith.addf %148, %150 : vector<32x1xf32>
    %152 = math.tanh %151 : vector<32x1xf32>
    %153 = arith.mulf %138, %152 : vector<32x1xf32>
    %cst_17 = arith.constant dense<0.000000e+00> : vector<1xf32>
    %154 = vector.multi_reduction <add>, %153, %cst_17 [0] : vector<32x1xf32> to vector<1xf32>
    %155 = vector.shape_cast %154 : vector<1xf32> to vector<1x1xf32>
    %156 = arith.addf %155, %142 : vector<1x1xf32>
    %157 = math.tanh %156 : vector<1x1xf32>
    %158 = arith.mulf %140, %152 : vector<32x1xf32>
    %cst_18 = arith.constant dense<0.000000e+00> : vector<1xf32>
    %159 = vector.multi_reduction <add>, %158, %cst_18 [0] : vector<32x1xf32> to vector<1xf32>
    %160 = vector.shape_cast %159 : vector<1xf32> to vector<1x1xf32>
    %161 = arith.addf %160, %144 : vector<1x1xf32>
    %162 = math.exp %157 : vector<1x1xf32>
    %163 = arith.mulf %134, %162 : vector<1x1xf32>
    %164 = arith.addf %163, %161 : vector<1x1xf32>
    %165 = arith.mulf %139, %152 : vector<32x1xf32>
    %cst_19 = arith.constant dense<0.000000e+00> : vector<1xf32>
    %166 = vector.multi_reduction <add>, %165, %cst_19 [0] : vector<32x1xf32> to vector<1xf32>
    %167 = vector.shape_cast %166 : vector<1xf32> to vector<1x1xf32>
    %168 = arith.addf %167, %143 : vector<1x1xf32>
    %169 = math.tanh %168 : vector<1x1xf32>
    %170 = arith.mulf %141, %152 : vector<32x1xf32>
    %cst_20 = arith.constant dense<0.000000e+00> : vector<1xf32>
    %171 = vector.multi_reduction <add>, %170, %cst_20 [0] : vector<32x1xf32> to vector<1xf32>
    %172 = vector.shape_cast %171 : vector<1xf32> to vector<1x1xf32>
    %173 = arith.addf %172, %145 : vector<1x1xf32>
    %174 = math.exp %169 : vector<1x1xf32>
    %175 = arith.mulf %134, %174 : vector<1x1xf32>
    %176 = arith.addf %175, %173 : vector<1x1xf32>
    %177 = vector.extract_strided_slice %1 {offsets = [0, 8], sizes = [32, 1], strides = [1, 1]} : vector<32x17xf32> to vector<32x1xf32>
    %178 = vector.extract_strided_slice %1 {offsets = [0, 9], sizes = [32, 1], strides = [1, 1]} : vector<32x17xf32> to vector<32x1xf32>
    %179 = vector.extract_strided_slice %1 {offsets = [0, 10], sizes = [32, 1], strides = [1, 1]} : vector<32x17xf32> to vector<32x1xf32>
    %180 = vector.extract_strided_slice %1 {offsets = [0, 11], sizes = [32, 1], strides = [1, 1]} : vector<32x17xf32> to vector<32x1xf32>
    %181 = vector.extract_strided_slice %1 {offsets = [0, 12], sizes = [32, 1], strides = [1, 1]} : vector<32x17xf32> to vector<32x1xf32>
    %182 = vector.extract_strided_slice %1 {offsets = [0, 13], sizes = [32, 1], strides = [1, 1]} : vector<32x17xf32> to vector<32x1xf32>
    %183 = vector.extract_strided_slice %1 {offsets = [0, 14], sizes = [32, 1], strides = [1, 1]} : vector<32x17xf32> to vector<32x1xf32>
    %184 = vector.extract_strided_slice %1 {offsets = [0, 15], sizes = [1, 1], strides = [1, 1]} : vector<32x17xf32> to vector<1x1xf32>
    %185 = vector.extract_strided_slice %1 {offsets = [1, 15], sizes = [1, 1], strides = [1, 1]} : vector<32x17xf32> to vector<1x1xf32>
    %186 = vector.extract_strided_slice %1 {offsets = [2, 15], sizes = [1, 1], strides = [1, 1]} : vector<32x17xf32> to vector<1x1xf32>
    %187 = vector.extract_strided_slice %1 {offsets = [3, 15], sizes = [1, 1], strides = [1, 1]} : vector<32x17xf32> to vector<1x1xf32>
    %188 = vector.broadcast %164 : vector<1x1xf32> to vector<32x1xf32>
    %189 = arith.mulf %177, %188 : vector<32x1xf32>
    %190 = arith.addf %179, %189 : vector<32x1xf32>
    %191 = vector.broadcast %176 : vector<1x1xf32> to vector<32x1xf32>
    %192 = arith.mulf %178, %191 : vector<32x1xf32>
    %193 = arith.addf %190, %192 : vector<32x1xf32>
    %194 = math.tanh %193 : vector<32x1xf32>
    %195 = arith.mulf %180, %194 : vector<32x1xf32>
    %cst_21 = arith.constant dense<0.000000e+00> : vector<1xf32>
    %196 = vector.multi_reduction <add>, %195, %cst_21 [0] : vector<32x1xf32> to vector<1xf32>
    %197 = vector.shape_cast %196 : vector<1xf32> to vector<1x1xf32>
    %198 = arith.addf %197, %184 : vector<1x1xf32>
    %199 = math.tanh %198 : vector<1x1xf32>
    %200 = arith.mulf %182, %194 : vector<32x1xf32>
    %cst_22 = arith.constant dense<0.000000e+00> : vector<1xf32>
    %201 = vector.multi_reduction <add>, %200, %cst_22 [0] : vector<32x1xf32> to vector<1xf32>
    %202 = vector.shape_cast %201 : vector<1xf32> to vector<1x1xf32>
    %203 = arith.addf %202, %186 : vector<1x1xf32>
    %204 = math.exp %199 : vector<1x1xf32>
    %205 = arith.mulf %134, %204 : vector<1x1xf32>
    %206 = arith.addf %205, %203 : vector<1x1xf32>
    %207 = arith.mulf %181, %194 : vector<32x1xf32>
    %cst_23 = arith.constant dense<0.000000e+00> : vector<1xf32>
    %208 = vector.multi_reduction <add>, %207, %cst_23 [0] : vector<32x1xf32> to vector<1xf32>
    %209 = vector.shape_cast %208 : vector<1xf32> to vector<1x1xf32>
    %210 = arith.addf %209, %185 : vector<1x1xf32>
    %211 = math.tanh %210 : vector<1x1xf32>
    %212 = arith.mulf %183, %194 : vector<32x1xf32>
    %cst_24 = arith.constant dense<0.000000e+00> : vector<1xf32>
    %213 = vector.multi_reduction <add>, %212, %cst_24 [0] : vector<32x1xf32> to vector<1xf32>
    %214 = vector.shape_cast %213 : vector<1xf32> to vector<1x1xf32>
    %215 = arith.addf %214, %187 : vector<1x1xf32>
    %216 = math.exp %211 : vector<1x1xf32>
    %217 = arith.mulf %134, %216 : vector<1x1xf32>
    %218 = arith.addf %217, %215 : vector<1x1xf32>
    %219 = vector.extract_strided_slice %1 {offsets = [0, 16], sizes = [12, 1], strides = [1, 1]} : vector<32x17xf32> to vector<12x1xf32>
    %220 = math.exp %219 : vector<12x1xf32>
    %221 = vector.extract_strided_slice %220 {offsets = [0, 0], sizes = [4, 1], strides = [1, 1]} : vector<12x1xf32> to vector<4x1xf32>
    %222 = vector.extract_strided_slice %220 {offsets = [4, 0], sizes = [4, 1], strides = [1, 1]} : vector<12x1xf32> to vector<4x1xf32>
    %223 = vector.extract_strided_slice %220 {offsets = [8, 0], sizes = [4, 1], strides = [1, 1]} : vector<12x1xf32> to vector<4x1xf32>
    %224 = vector.extract_strided_slice %221 {offsets = [0, 0], sizes = [1, 1], strides = [1, 1]} : vector<4x1xf32> to vector<1x1xf32>
    %cst_25 = arith.constant 0.000000e+00 : f32
    %225 = vector.broadcast %cst_25 : f32 to vector<1x1xf32>
    %226 = arith.subf %225, %224 : vector<1x1xf32>
    %227 = vector.broadcast %206 : vector<1x1xf32> to vector<1x256xf32>
    %228 = arith.subf %108, %227 : vector<1x256xf32>
    %229 = vector.broadcast %226 : vector<1x1xf32> to vector<1x256xf32>
    %230 = arith.mulf %229, %228 : vector<1x256xf32>
    %231 = vector.extract_strided_slice %221 {offsets = [1, 0], sizes = [1, 1], strides = [1, 1]} : vector<4x1xf32> to vector<1x1xf32>
    %cst_26 = arith.constant 0.000000e+00 : f32
    %232 = vector.broadcast %cst_26 : f32 to vector<1x1xf32>
    %233 = arith.subf %232, %231 : vector<1x1xf32>
    %234 = vector.broadcast %218 : vector<1x1xf32> to vector<1x256xf32>
    %235 = arith.subf %124, %234 : vector<1x256xf32>
    %236 = vector.broadcast %233 : vector<1x1xf32> to vector<1x256xf32>
    %237 = arith.mulf %236, %235 : vector<1x256xf32>
    %238 = vector.extract_strided_slice %221 {offsets = [2, 0], sizes = [1, 1], strides = [1, 1]} : vector<4x1xf32> to vector<1x1xf32>
    %cst_27 = arith.constant 0.000000e+00 : f32
    %239 = vector.broadcast %cst_27 : f32 to vector<1x1xf32>
    %240 = arith.subf %239, %238 : vector<1x1xf32>
    %241 = vector.broadcast %164 : vector<1x1xf32> to vector<1x256xf32>
    %242 = arith.subf %46, %241 : vector<1x256xf32>
    %243 = vector.broadcast %240 : vector<1x1xf32> to vector<1x256xf32>
    %244 = arith.mulf %243, %242 : vector<1x256xf32>
    %245 = vector.extract_strided_slice %221 {offsets = [3, 0], sizes = [1, 1], strides = [1, 1]} : vector<4x1xf32> to vector<1x1xf32>
    %cst_28 = arith.constant 0.000000e+00 : f32
    %246 = vector.broadcast %cst_28 : f32 to vector<1x1xf32>
    %247 = arith.subf %246, %245 : vector<1x1xf32>
    %248 = vector.broadcast %176 : vector<1x1xf32> to vector<1x256xf32>
    %249 = arith.subf %62, %248 : vector<1x256xf32>
    %250 = vector.broadcast %247 : vector<1x1xf32> to vector<1x256xf32>
    %251 = arith.mulf %250, %249 : vector<1x256xf32>
    %252 = vector.broadcast %72 : vector<32x1xf32> to vector<32x256xf32>
    %253 = vector.broadcast %244 : vector<1x256xf32> to vector<32x256xf32>
    %254 = arith.mulf %252, %253 : vector<32x256xf32>
    %255 = vector.broadcast %73 : vector<32x1xf32> to vector<32x256xf32>
    %256 = vector.broadcast %251 : vector<1x256xf32> to vector<32x256xf32>
    %257 = arith.mulf %255, %256 : vector<32x256xf32>
    %258 = arith.addf %254, %257 : vector<32x256xf32>
    %259 = arith.mulf %127, %258 : vector<32x256xf32>
    %260 = vector.broadcast %75 : vector<32x1xf32> to vector<32x256xf32>
    %261 = arith.mulf %260, %259 : vector<32x256xf32>
    %cst_29 = arith.constant dense<0.000000e+00> : vector<256xf32>
    %262 = vector.multi_reduction <add>, %261, %cst_29 [0] : vector<32x256xf32> to vector<256xf32>
    %263 = vector.shape_cast %262 : vector<256xf32> to vector<1x256xf32>
    %264 = vector.broadcast %77 : vector<32x1xf32> to vector<32x256xf32>
    %265 = arith.mulf %264, %259 : vector<32x256xf32>
    %cst_30 = arith.constant dense<0.000000e+00> : vector<256xf32>
    %266 = vector.multi_reduction <add>, %265, %cst_30 [0] : vector<32x256xf32> to vector<256xf32>
    %267 = vector.shape_cast %266 : vector<256xf32> to vector<1x256xf32>
    %268 = arith.mulf %2, %106 : vector<1x256xf32>
    %269 = arith.mulf %268, %130 : vector<1x256xf32>
    %270 = arith.mulf %269, %263 : vector<1x256xf32>
    %271 = arith.addf %270, %267 : vector<1x256xf32>
    %272 = arith.subf %230, %271 : vector<1x256xf32>
    %cst_31 = arith.constant 0.000000e+00 : f32
    %273 = vector.broadcast %cst_31 : f32 to vector<1x256xf32>
    %274 = arith.subf %273, %99 : vector<1x256xf32>
    %275 = math.exp %274 : vector<1x256xf32>
    %276 = arith.mulf %272, %275 : vector<1x256xf32>
    %277 = vector.broadcast %76 : vector<32x1xf32> to vector<32x256xf32>
    %278 = arith.mulf %277, %259 : vector<32x256xf32>
    %cst_32 = arith.constant dense<0.000000e+00> : vector<256xf32>
    %279 = vector.multi_reduction <add>, %278, %cst_32 [0] : vector<32x256xf32> to vector<256xf32>
    %280 = vector.shape_cast %279 : vector<256xf32> to vector<1x256xf32>
    %281 = vector.broadcast %78 : vector<32x1xf32> to vector<32x256xf32>
    %282 = arith.mulf %281, %259 : vector<32x256xf32>
    %cst_33 = arith.constant dense<0.000000e+00> : vector<256xf32>
    %283 = vector.multi_reduction <add>, %282, %cst_33 [0] : vector<32x256xf32> to vector<256xf32>
    %284 = vector.shape_cast %283 : vector<256xf32> to vector<1x256xf32>
    %285 = arith.mulf %3, %122 : vector<1x256xf32>
    %286 = arith.mulf %285, %133 : vector<1x256xf32>
    %287 = arith.mulf %286, %280 : vector<1x256xf32>
    %288 = arith.addf %287, %284 : vector<1x256xf32>
    %289 = arith.subf %237, %288 : vector<1x256xf32>
    %cst_34 = arith.constant 0.000000e+00 : f32
    %290 = vector.broadcast %cst_34 : f32 to vector<1x256xf32>
    %291 = arith.subf %290, %115 : vector<1x256xf32>
    %292 = math.exp %291 : vector<1x256xf32>
    %293 = arith.mulf %289, %292 : vector<1x256xf32>
    %294 = vector.broadcast %10 : vector<32x1xf32> to vector<32x256xf32>
    %295 = vector.broadcast %276 : vector<1x256xf32> to vector<32x256xf32>
    %296 = arith.mulf %294, %295 : vector<32x256xf32>
    %297 = vector.broadcast %11 : vector<32x1xf32> to vector<32x256xf32>
    %298 = vector.broadcast %293 : vector<1x256xf32> to vector<32x256xf32>
    %299 = arith.mulf %297, %298 : vector<32x256xf32>
    %300 = arith.addf %296, %299 : vector<32x256xf32>
    %301 = arith.mulf %65, %300 : vector<32x256xf32>
    %302 = vector.broadcast %13 : vector<32x1xf32> to vector<32x256xf32>
    %303 = arith.mulf %302, %301 : vector<32x256xf32>
    %cst_35 = arith.constant dense<0.000000e+00> : vector<256xf32>
    %304 = vector.multi_reduction <add>, %303, %cst_35 [0] : vector<32x256xf32> to vector<256xf32>
    %305 = vector.shape_cast %304 : vector<256xf32> to vector<1x256xf32>
    %306 = vector.broadcast %15 : vector<32x1xf32> to vector<32x256xf32>
    %307 = arith.mulf %306, %301 : vector<32x256xf32>
    %cst_36 = arith.constant dense<0.000000e+00> : vector<256xf32>
    %308 = vector.multi_reduction <add>, %307, %cst_36 [0] : vector<32x256xf32> to vector<256xf32>
    %309 = vector.shape_cast %308 : vector<256xf32> to vector<1x256xf32>
    %310 = arith.mulf %4, %44 : vector<1x256xf32>
    %311 = arith.mulf %310, %68 : vector<1x256xf32>
    %312 = arith.mulf %311, %305 : vector<1x256xf32>
    %313 = arith.addf %312, %309 : vector<1x256xf32>
    %314 = arith.subf %244, %313 : vector<1x256xf32>
    %cst_37 = arith.constant 0.000000e+00 : f32
    %315 = vector.broadcast %cst_37 : f32 to vector<1x256xf32>
    %316 = arith.subf %315, %37 : vector<1x256xf32>
    %317 = math.exp %316 : vector<1x256xf32>
    %318 = arith.mulf %314, %317 : vector<1x256xf32>
    %319 = vector.broadcast %14 : vector<32x1xf32> to vector<32x256xf32>
    %320 = arith.mulf %319, %301 : vector<32x256xf32>
    %cst_38 = arith.constant dense<0.000000e+00> : vector<256xf32>
    %321 = vector.multi_reduction <add>, %320, %cst_38 [0] : vector<32x256xf32> to vector<256xf32>
    %322 = vector.shape_cast %321 : vector<256xf32> to vector<1x256xf32>
    %323 = vector.broadcast %16 : vector<32x1xf32> to vector<32x256xf32>
    %324 = arith.mulf %323, %301 : vector<32x256xf32>
    %cst_39 = arith.constant dense<0.000000e+00> : vector<256xf32>
    %325 = vector.multi_reduction <add>, %324, %cst_39 [0] : vector<32x256xf32> to vector<256xf32>
    %326 = vector.shape_cast %325 : vector<256xf32> to vector<1x256xf32>
    %327 = arith.mulf %5, %60 : vector<1x256xf32>
    %328 = arith.mulf %327, %71 : vector<1x256xf32>
    %329 = arith.mulf %328, %322 : vector<1x256xf32>
    %330 = arith.addf %329, %326 : vector<1x256xf32>
    %331 = arith.subf %251, %330 : vector<1x256xf32>
    %cst_40 = arith.constant 0.000000e+00 : f32
    %332 = vector.broadcast %cst_40 : f32 to vector<1x256xf32>
    %333 = arith.subf %332, %53 : vector<1x256xf32>
    %334 = math.exp %333 : vector<1x256xf32>
    %335 = arith.mulf %331, %334 : vector<1x256xf32>
    %336 = vector.extract_strided_slice %222 {offsets = [0, 0], sizes = [1, 1], strides = [1, 1]} : vector<4x1xf32> to vector<1x1xf32>
    %337 = vector.broadcast %336 : vector<1x1xf32> to vector<1x256xf32>
    %338 = arith.mulf %337, %6 : vector<1x256xf32>
    %339 = arith.subf %276, %338 : vector<1x256xf32>
    %340 = vector.extract_strided_slice %222 {offsets = [1, 0], sizes = [1, 1], strides = [1, 1]} : vector<4x1xf32> to vector<1x1xf32>
    %341 = vector.broadcast %340 : vector<1x1xf32> to vector<1x256xf32>
    %342 = arith.mulf %341, %7 : vector<1x256xf32>
    %343 = arith.subf %293, %342 : vector<1x256xf32>
    %344 = vector.extract_strided_slice %222 {offsets = [2, 0], sizes = [1, 1], strides = [1, 1]} : vector<4x1xf32> to vector<1x1xf32>
    %345 = vector.broadcast %344 : vector<1x1xf32> to vector<1x256xf32>
    %346 = arith.mulf %345, %8 : vector<1x256xf32>
    %347 = arith.subf %318, %346 : vector<1x256xf32>
    %348 = vector.extract_strided_slice %222 {offsets = [3, 0], sizes = [1, 1], strides = [1, 1]} : vector<4x1xf32> to vector<1x1xf32>
    %349 = vector.broadcast %348 : vector<1x1xf32> to vector<1x256xf32>
    %350 = arith.mulf %349, %9 : vector<1x256xf32>
    %351 = arith.subf %335, %350 : vector<1x256xf32>
    %352 = vector.shape_cast %223 : vector<4x1xf32> to vector<4x1xf32>
    %353 = vector.broadcast %352 : vector<4x1xf32> to vector<4x256xf32>
    %354 = tpu.concatenate %339, %343, %347, %351, %353 in 0 : vector<1x256xf32>, vector<1x256xf32>, vector<1x256xf32>, vector<1x256xf32>, vector<4x256xf32> -> vector<8x256xf32>
    %c0_41 = arith.constant 0 : index
    %c0_42 = arith.constant 0 : index
    %355 = vector.load %arg3[%c0_41, %c0_42] : memref<8x256xf32, #tpu.memory_space<vmem>>, vector<8x256xf32>
    tpu.vector_store %arg3[%c0_41, %c0_42], %354 {strides = array<i32>} : memref<8x256xf32, #tpu.memory_space<vmem>>, vector<8x256xf32>,
    return
  }
  func.func @transform_0(%arg0: i32) -> (i32, i32) {
    %c0_i32 = arith.constant 0 : i32
    %c0_i32_0 = arith.constant 0 : i32
    return %c0_i32, %arg0 : i32, i32
  }
  func.func @transform_1(%arg0: i32) -> (i32, i32) {
    %c0_i32 = arith.constant 0 : i32
    %c0_i32_0 = arith.constant 0 : i32
    %c0_i32_1 = arith.constant 0 : i32
    return %c0_i32, %c0_i32_0 : i32, i32
  }
  func.func @transform_2(%arg0: i32) -> (i32, i32) {
    %c0_i32 = arith.constant 0 : i32
    %c0_i32_0 = arith.constant 0 : i32
    return %c0_i32, %arg0 : i32, i32
  }
}

</mosaic_0001>

<bundles_post_ra>
// kernel: tpu_custom_call.1
= control target key start
LH: loop header
LB: loop body
LE: loop exit
PB: predicated region body
PF: predicated region fallthrough
CT: control target
= control target key end

     0   :  { %7 = vsyncpa [#allocation3], 0  ;;  %s3321_s0 = inlined_call_operand.vmem [shape: f32[8,512], index: 0, kind: input, shape index: {}]   ;;  %s3322_s1 = inlined_call_operand.vmem [shape: f32[32,17], index: 1, kind: input, shape index: {}]   ;;  %s3323_s2 = inlined_call_operand.hbm [shape: f32[8,512], index: 2, kind: output, shape index: {}]  }
   0x1   :  { %9 = vsyncpa [#allocation3 + $0x1], 0  ;;  %s2112_s9 = smov 0   ;;  %s2114_s10 = smov 0  }
   0x2   :  { %s2116_s11 = smov 0   ;;  %s2118_s12 = smov 0  }
   0x3 LB: > { %s2133_s13 = sadd.s32 4294967295, %s2069_s12   ;;  %s1758_s14 = sadd.s32 4294967294, %s2069_s12   ;;  %s2069_s12 = sphi %s2118_s12, %s3547_s12   ;;  %s2065_s11 = sphi %s2116_s11, %s3546_s11   ;;  %s2061_s10 = sphi %s2114_s10, %s3545_s10   ;;  %s2057_s9 = sphi %s2112_s9, %s3544_s9  }
   0x4   : > { %s2137_s15 = sadd.s32 1, %s2069_s12   ;;  %s69_s16 = sadd.s32 1, %s2065_s11 }
   0x5   : > { %s66_s17 = ssub.s32 %s2069_s12, %s2137_s15  ;;  %p79_p0 = scmp.ne.s32.totalorder %s2065_s11, %s2061_s10 }
   0x6   : > { %p67_p1 = scmp.eq.s32.totalorder %s66_s17, 0  ;;  %p80_p2 = scmp.eq.s32.totalorder %s2133_s13, 1 }
   0x7   : > { %p85_p3 = scmp.ne.s32.totalorder %s2061_s10, %s2057_s9  ;;  %p86_p4 = scmp.eq.s32.totalorder %s1758_s14, 1 }
   0x8   : > { %s2148_s18 = scalar_select %p67_p1, %s2065_s11, %s69_s16  }
   0x9   : > { %p2150_p5 = por %p80_p2, %p79_p0  ;;  %p2154_p6 = por %p86_p4, %p85_p3 }
   0xa   : > { %p1761_p7 = scmp.ge.s32.totalorder %s2069_s12, 1  ;;  %p116_p8 = scmp.lt.s32.totalorder %s2069_s12, 3 }
   0xc   : > { %p117_p9 = pnand %p1761_p7, %p116_p8 }
   0xe   : > { %120 = sbr.rel (%p117_p9) target bundleno = 1173 (0x495), region = 28 }
  0x13   : > { %v2163_v0 = vld [vmem:[%s3322_s1 + $0x10] sm:$0xff]  ;;  %v2168_v1 = vld [vmem:[%s3322_s1] sm:$0xff]  ;;  %v2071_v2 = vmov 2   ;;  %v2072_v3 = vmov 0   ;;  %v2176_v4 = vld [vmem:[%s3322_s1 + $0x18] sm:$0xff]  ;;  %v2073_v6 = vmov 1  }
  0x14   : > { %1838 = vset.pattern.permute.xlu2 %v2071_v2  ;;  %1837 = vset.pattern.permute.xlu1 %v2072_v3  ;;  %v2181_v5 = vld [vmem:[%s3322_s1 + $0x8] sm:$0xff]  ;;  %v3324_v7 = vmov 3   ;;  %v2075_v8 = vmov 7   ;;  %v811_v9 = vmul.f32 0.0, %v2168_v1  ;;  %s2076_s29 = smov 2   ;;  %v3325_v10 = vmov 4  }
  0x15   : > { %1836 = vset.pattern.permute.xlu0 %v2072_v3  ;;  %163 = vperm.xlu1 %1837, %v2163_v0   ;;  %v2078_v11 = vmov 5   ;;  %s2079_s30 = smov 1   ;;  %v813_v12 = vmul.f32 0.0, %v2163_v0  ;;  %v812_v13 = vmul.f32 0.0, %v2181_v5  ;;  %v814_v14 = vmul.f32 0.0, %v2176_v4  ;;  %s1763_s3 = sshll.u32 %s2133_s13, 1 }
  0x16   : > { %182 = vperm.xlu2 %1838, %v2168_v1   ;;  %153 = vperm.xlu0 %1836, %v2168_v1   ;;  %p139_p10 = scmp.lt.s32.totalorder %s1763_s3, 3  ;;  %s2080_s8 = smov 3   ;;  %vm989_vm0 = vcmask 56368   ;;  %vm910_vm1 = vcmask 48168   ;;  %vm875_vm2 = vcmask 31768   ;;  %vm953_vm3 = vcmask 39968  }
  0x17   : > { %s2081_s14 = smov 4   ;;  %s2083_s16 = smov 126   ;;  %vm1201_vm4 = vcmask 121968   ;;  %vm1130_vm5 = vcmask 113768   ;;  %vm1169_vm6 = vcmask 105568   ;;  %vm1098_vm7 = vcmask 97368  }
  0x18   : > { %s3549_s3 = smov (!%p139_p10, %s1763_s3), 3  ;;  %s2084_s17 = smov 124   ;;  %vm1668_vm8 = vcmask 1040384   ;;  %vm1671_vm9 = vcmask 1041408   ;;  %vm1674_vm10 = vcmask 1042432   ;;  %vm1677_vm11 = vcmask 1043456  }
  0x19   : > { %s1764_s4 = sshll.u32 %s3549_s3, 3  ;;  %s2085_s21 = smov 127  }
  0x1a   : > { %s2238_s7 = scalar_lea.vmem %s3321_s0, %s1764_s4  ;;  %s2086_s22 = smov 125  }
  0x1b   : > { %v2241_v23 = vld [vmem:[%s2238_s7] sm:$0xff]  ;;  %v2244_v24 = vld [vmem:[%s2238_s7 + $0x8] sm:$0xff]  ;;  %s2089_s23 = smov 5   ;;  %s135_s4 = sand.u32 1, %s2061_s10  }
  0x1c   : > { %v171_v25 = vperm.slane %v2241_v23, 0  ;;  %v221_v28 = vperm.slane %v2241_v23, 1  ;;  %v172_v29 = vperm.slane %v2244_v24, 0  ;;  %v222_v32 = vperm.slane %v2244_v24, 1  ;;  %s1762_s5 = sshll.u32 %s135_s4, 4  ;;  %s1770_s6 = sshll.u32 %s2133_s13, 4 }
  0x1d   : > { %168 = vperm.xlu1 %1837, %v2176_v4   ;;  %s137_s13 = scalar_lea.vmem [#allocation2], %s1762_s5  ;;  %s2027_s26 = scalar_lea.hbm %s3323_s2, 32 }
  0x1e   : > { %186 = vperm.xlu2 %1838, %v2181_v5   ;;  %158 = vperm.xlu0 %1836, %v2181_v5  }
  0x25   : > { %1840 = vset.pattern.permute.xlu1 %v2071_v2 }
  0x26   : > { %1841 = vset.pattern.permute.xlu2 %v2073_v6  ;;  %1839 = vset.pattern.permute.xlu0 %v2071_v2 }
  0x27   : > { %194 = vperm.xlu1 %1840, %v2176_v4   ;;  %206 = vperm.xlu2 %1841, %v2168_v1  }
  0x28   : > { %190 = vperm.xlu0 %1839, %v2163_v0  }
  0x2f   : > { %1842 = vset.pattern.permute.xlu1 %v2073_v6  ;;  %214 = vperm.xlu2 %1841, %v2163_v0  }
  0x30   : > { %1843 = vset.pattern.permute.xlu0 %v2073_v6  ;;  %210 = vperm.xlu1 %1842, %v2181_v5  }
  0x31   : > { %218 = vperm.xlu0 %1843, %v2176_v4  }
  0x37   : > { %1845 = vset.pattern.permute.xlu2 %v3324_v7 }
  0x38   : > { %1844 = vset.pattern.permute.xlu1 %v3324_v7  ;;  %252 = vperm.xlu2 %1845, %v2181_v5  }
  0x39   : > { %1846 = vset.pattern.permute.xlu0 %v2075_v8  ;;  %248 = vperm.xlu1 %1844, %v2168_v1  }
  0x3a   : > { %290 = vperm.xlu0 %1846, %v2168_v1  }
  0x40   : > { %260 = vperm.xlu2 %1845, %v2176_v4  }
  0x41   : > { %256 = vperm.xlu1 %1844, %v2163_v0  }
  0x42   : > { %819 = vrot.lane.b32.xlu0 %v811_v9, %s2076_s29 }
  0x43   : > { %1850 = vset.pattern.permute.xlu0 %v3325_v10 }
  0x48   : > { %1848 = vset.pattern.permute.xlu2 %v2078_v11 }
  0x49   : > { %1847 = vset.pattern.permute.xlu1 %v2078_v11  ;;  %302 = vperm.xlu2 %1848, %v2181_v5  }
  0x4a   : > { %835 = vrot.lane.b32.xlu0 %v811_v9, %s2079_s30  ;;  %298 = vperm.xlu1 %1847, %v2168_v1  }
  0x51   : > { %310 = vperm.xlu2 %1848, %v2176_v4  }
  0x52   : > { %839 = vrot.lane.b32.xlu0 %v813_v12, %s2079_s30  ;;  %306 = vperm.xlu1 %1847, %v2163_v0  }
  0x59   : > { %823 = vrot.lane.b32.xlu2 %v813_v12, %s2076_s29 }
  0x5a   : > { %360 = vperm.xlu0 %1850, %v2181_v5   ;;  %821 = vrot.lane.b32.xlu1 %v812_v13, %s2076_s29 }
  0x5b   : > { %1849 = vset.pattern.permute.xlu2 %v3325_v10  ;;  %1851 = vset.pattern.permute.xlu1 %v3325_v10 }
  0x61   : > { %825 = vrot.lane.b32.xlu2 %v814_v14, %s2076_s29 }
  0x62   : > { %837 = vrot.lane.b32.xlu1 %v812_v13, %s2079_s30 }
  0x69   : > { %356 = vperm.xlu2 %1849, %v2168_v1  }
  0x6a   : > { %841 = vrot.lane.b32.xlu1 %v814_v14, %s2079_s30 }
  0x70   : > { %v183_v15 = vpop.permute.xlu2 %182 }
  0x71   : > { %368 = vperm.xlu2 %1849, %v2176_v4  }
  0x72   : > { %364 = vperm.xlu1 %1851, %v2163_v0  }
  0x78   : > { %v187_v16 = vpop.permute.xlu2 %186 }
  0x81   : > { %v2222_v17 = vpop.permute.xlu2 %206 }
  0x82   : > { %3418 = vst [vmem:[#allocation5_spill] sm:$0xff] %v2222_v17  ;;  %v223_v34 = vmul.f32 %v221_v28, %v2222_v17  ;;  %v224_v38 = vmul.f32 %v222_v32, %v2222_v17 }
  0x87   : > { %v2225_v18 = vpop.permute.xlu1 %163 }
  0x88   : > { %3419 = vst [vmem:[#allocation6_spill] sm:$0xff] %v2225_v18  ;;  %v2227_v19 = vpop.permute.xlu0 %153  ;;  %v177_v40 = vmul.f32 %v171_v25, %v2225_v18  ;;  %v178_v41 = vmul.f32 %v172_v29, %v2225_v18 }
  0x89   : > { %3420 = vst [vmem:[#allocation7_spill] sm:$0xff] %v2227_v19  ;;  %v2229_v20 = vpop.permute.xlu2 %214  ;;  %v173_v30 = vmul.f32 %v171_v25, %v2227_v19  ;;  %v174_v33 = vmul.f32 %v172_v29, %v2227_v19 }
  0x8a   : > { %3421 = vst [vmem:[#allocation8_spill] sm:$0xff] %v2229_v20  ;;  %v227_v42 = vmul.f32 %v221_v28, %v2229_v20  ;;  %v228_v46 = vmul.f32 %v222_v32, %v2229_v20 }
  0x8b   : > { %v197_v35 = vadd.f32 %v183_v15, %v173_v30  ;;  %v198_v39 = vadd.f32 %v183_v15, %v174_v33 }
  0x8d   : > { %v231_v43 = vadd.f32 %v223_v34, %v197_v35  ;;  %v232_v54 = vadd.f32 %v224_v38, %v198_v39 }
  0x8f   : > { %v2231_v21 = vpop.permute.xlu1 %168  ;;  %1883 = vtanh.f32 %v231_v43 }
  0x90   : > { %3422 = vst [vmem:[#allocation9_spill] sm:$0xff] %v2231_v21  ;;  %v2233_v22 = vpop.permute.xlu0 %158  ;;  %v179_v55 = vmul.f32 %v171_v25, %v2231_v21  ;;  %v180_v57 = vmul.f32 %v172_v29, %v2231_v21 }
  0x91   : > { %3423 = vst [vmem:[#allocation10_spill] sm:$0xff] %v2233_v22  ;;  %v175_v36 = vmul.f32 %v171_v25, %v2233_v22  ;;  %v176_v37 = vmul.f32 %v172_v29, %v2233_v22 }
  0x92   : > { %v2247_v26 = vpop.permute.xlu2 %252 }
  0x93   : > { %3424 = vst [vmem:[#allocation11_spill] sm:$0xff] %v2247_v26  ;;  %v199_v44 = vadd.f32 %v187_v16, %v175_v36  ;;  %v200_v49 = vadd.f32 %v187_v16, %v176_v37 }
  0x95   : > { %v2276_v9 = vpop.eup %1883 }
  0x96   : > { %3429 = vst [vmem:[#allocation16_spill] sm:$0xff] %v2276_v9 }
  0x99   : > { %v195_v27 = vpop.permute.xlu1 %194 }
  0x9a   : > { %v191_v31 = vpop.permute.xlu0 %190  ;;  %v2262_v47 = vpop.permute.xlu2 %260  ;;  %v203_v61 = vadd.f32 %v195_v27, %v179_v55  ;;  %v204_v63 = vadd.f32 %v195_v27, %v180_v57 }
  0x9b   : > { %v201_v45 = vadd.f32 %v191_v31, %v177_v40  ;;  %3425 = vst [vmem:[#allocation12_spill] sm:$0xff] %v2262_v47  ;;  %v202_v50 = vadd.f32 %v191_v31, %v178_v41 }
  0x9d   : > { %v235_v62 = vadd.f32 %v227_v42, %v201_v45  ;;  %v236_v2 = vadd.f32 %v228_v46, %v202_v50 }
  0xa2   : > { %v2264_v48 = vpop.permute.xlu1 %210 }
  0xa3   : > { %3426 = vst [vmem:[#allocation13_spill] sm:$0xff] %v2264_v48  ;;  %v225_v51 = vmul.f32 %v221_v28, %v2264_v48  ;;  %v226_v52 = vmul.f32 %v222_v32, %v2264_v48  ;;  %v2268_v53 = vpop.permute.xlu0 %218  ;;  %v2278_v11 = vpop.permute.xlu2 %302 }
  0xa4   : > { %3427 = vst [vmem:[#allocation14_spill] sm:$0xff] %v2268_v53  ;;  %v229_v56 = vmul.f32 %v221_v28, %v2268_v53  ;;  %v230_v60 = vmul.f32 %v222_v32, %v2268_v53 }
  0xa5   : > { %v233_v58 = vadd.f32 %v225_v51, %v199_v44  ;;  %v234_v59 = vadd.f32 %v226_v52, %v200_v49  ;;  %3430 = vst [vmem:[#allocation17_spill] sm:$0xff] %v2278_v11 }
  0xa6   : > { %v237_v3 = vadd.f32 %v229_v56, %v203_v61  ;;  %v238_v6 = vadd.f32 %v230_v60, %v204_v63 }
  0xa7   : > { %1885 = vtanh.f32 %v233_v58 }
  0xa8   : > { %1887 = vtanh.f32 %v234_v59 }
  0xa9   : > { %1889 = vtanh.f32 %v232_v54 }
  0xaa   : > { %1891 = vtanh.f32 %v235_v62 }
  0xab   : > { %1893 = vtanh.f32 %v236_v2  ;;  %v2274_v8 = vpop.permute.xlu1 %248  ;;  %v2310_v39 = vpop.permute.xlu2 %310 }
  0xac   : > { %3428 = vst [vmem:[#allocation15_spill] sm:$0xff] %v2274_v8  ;;  %1895 = vtanh.f32 %v237_v3  ;;  %v2280_v12 = vpop.permute.xlu0 %290  ;;  %v263_v30 = vmul.f32 %v2276_v9, %v2274_v8 }
  0xad   : > { %v2282_v13 = vpop.eup %1885  ;;  %1897 = vtanh.f32 %v238_v6  ;;  %3439 = vst [vmem:[#allocation26_spill] sm:$0xff] %v2310_v39 }
  0xae   : > { %3431 = vst [vmem:[#allocation18_spill] sm:$0xff] %v2282_v13  ;;  %v2284_v14 = vpop.eup %1887  ;;  %v265_v25 = vmul.f32 %v2282_v13, %v2247_v26 }
  0xaf   : > { %3432 = vst [vmem:[#allocation19_spill] sm:$0xff] %v2284_v14  ;;  %v2286_v15 = vpop.eup %1889  ;;  %v266_v27 = vmul.f32 %v2284_v14, %v2247_v26 }
  0xb0   : > { %3433 = vst [vmem:[#allocation20_spill] sm:$0xff] %v2286_v15  ;;  %v2288_v16 = vpop.eup %1891  ;;  %v264_v31 = vmul.f32 %v2286_v15, %v2274_v8  ;;  %v271_v34 = vadd.f32 %v265_v25, %v263_v30 }
  0xb1   : > { %3434 = vst [vmem:[#allocation21_spill] sm:$0xff] %v2288_v16  ;;  %v2294_v28 = vpop.eup %1893 }
  0xb2   : > { %3435 = vst [vmem:[#allocation22_spill] sm:$0xff] %v2294_v28  ;;  %v2296_v29 = vpop.eup %1895  ;;  %v280_v35 = vadd.f32 %v266_v27, %v264_v31 }
  0xb3   : > { %3436 = vst [vmem:[#allocation23_spill] sm:$0xff] %v2296_v29  ;;  %v2302_v32 = vpop.eup %1897  ;;  %v2304_v33 = vpop.permute.xlu1 %256  ;;  %v269_v40 = vmul.f32 %v2296_v29, %v2262_v47 }
  0xb4   : > { %3437 = vst [vmem:[#allocation24_spill] sm:$0xff] %v2302_v32  ;;  %v267_v36 = vmul.f32 %v2288_v16, %v2304_v33  ;;  %v268_v37 = vmul.f32 %v2294_v28, %v2304_v33  ;;  %v820_v38 = vpop.permute.xlu0 %819  ;;  %v270_v41 = vmul.f32 %v2302_v32, %v2262_v47  ;;  %v824_v61 = vpop.permute.xlu2 %823 }
  0xb5   : > { %3438 = vst [vmem:[#allocation25_spill] sm:$0xff] %v2304_v33  ;;  %v831_v46 = vadd.f32 %v820_v38, %v2168_v1  ;;  %v833_v62 = vadd.f32 %v824_v61, %v2163_v0 }
  0xb6   : > { %v272_v42 = vadd.f32 %v271_v34, %v267_v36  ;;  %v281_v43 = vadd.f32 %v280_v35, %v268_v37 }
  0xb8   : > { %v273_v44 = vadd.f32 %v272_v42, %v269_v40  ;;  %v282_v45 = vadd.f32 %v281_v43, %v270_v41 }
  0xba   : > { %v274_v49 = vrot.slane %v273_v44, 4  ;;  %v283_v50 = vrot.slane %v282_v45, 4 }
  0xbc   : > { %v275_v51 = vadd.f32 %v274_v49, %v273_v44  ;;  %v284_v52 = vadd.f32 %v283_v50, %v282_v45  ;;  %v836_v54 = vpop.permute.xlu0 %835  ;;  %v2317_v55 = vpop.permute.xlu1 %298 }
  0xbd   : > { %3440 = vst [vmem:[#allocation27_spill] sm:$0xff] %v2317_v55  ;;  %v847_v56 = vadd.f32 %v836_v54, %v831_v46 }
  0xbe   : > { %v276_v57 = vrot.slane %v275_v51, 2  ;;  %v285_v58 = vrot.slane %v284_v52, 2 }
  0xbf   : > { %1899 = vtanh.f32 %v847_v56 }
  0xc0   : > { %v277_v59 = vadd.f32 %v276_v57, %v275_v51  ;;  %v286_v60 = vadd.f32 %v285_v58, %v284_v52  ;;  %v826_v52 = vpop.permute.xlu2 %825 }
  0xc1   : > { %v834_v57 = vadd.f32 %v826_v52, %v2176_v4 }
  0xc2   : > { %v278_v63 = vrot.slane %v277_v59, 1  ;;  %v287_v2 = vrot.slane %v286_v60, 1 }
  0xc4   : > { %v279_v3 = vadd.f32 %v278_v63, %v277_v59  ;;  %v288_v6 = vadd.f32 %v287_v2, %v286_v60  ;;  %v840_v25 = vpop.permute.xlu0 %839  ;;  %v2320_v27 = vpop.permute.xlu1 %306 }
  0xc5   : > { %3441 = vst [vmem:[#allocation28_spill] sm:$0xff] %v2320_v27  ;;  %v1900_v30 = vpop.eup %1899  ;;  %v849_v31 = vadd.f32 %v840_v25, %v833_v62 }
  0xc6   : > { %v293_v34 = vadd.f32 %v2280_v12, %v279_v3  ;;  %v294_v35 = vadd.f32 %v2280_v12, %v288_v6  ;;  %894 = vrot.lane.b32.xlu1 %v1900_v30, %s2080_s8 }
  0xc7   : > { %1901 = vtanh.f32 %v849_v31 }
  0xc8   : > { %1903 = vtanh.f32 %v293_v34  ;;  %v924_v34 = vrot.slane %v2168_v1, 2 }
  0xc9   : > { %1905 = vtanh.f32 %v294_v35  ;;  %v1003_v35 = vrot.slane %v2168_v1, 3 }
  0xcc   : > { %v822_v36 = vpop.permute.xlu1 %821 }
  0xcd   : > { %v1902_v37 = vpop.eup %1901  ;;  %v832_v43 = vadd.f32 %v822_v36, %v2181_v5  ;;  %v2087_v36 = vmov 8  }
  0xce   : > { %v2325_v38 = vpop.eup %1903  ;;  %973 = vrot.lane.b32.xlu1 %v1900_v30, %s2081_s14  ;;  %898 = vrot.lane.b32.xlu0 %v1902_v37, %s2080_s8 }
  0xcf   : > { %3442 = vst [vmem:[#allocation29_spill] sm:$0xff] %v2325_v38  ;;  %v2329_v40 = vpop.eup %1905  ;;  %v341_v41 = vmul.f32 1.442695, %v2325_v38  ;;  %v475_v44 = vmul.f32 %v2325_v38, %v2325_v38 }
  0xd0   : > { %3443 = vst [vmem:[#allocation30_spill] sm:$0xff] %v2329_v40  ;;  %v343_v42 = vmul.f32 1.442695, %v2329_v40  ;;  %v476_v46 = vmul.f32 %v2329_v40, %v2329_v40 }
  0xd1   : > { %1907 = vpow2.f32 %v341_v41  ;;  %v477_v50 = vsub.f32 1.0, %v475_v44  ;;  %v2373_v41 = vpop.permute.xlu2 %356 }
  0xd2   : > { %1909 = vpow2.f32 %v343_v42  ;;  %v478_v54 = vsub.f32 1.0, %v476_v46  ;;  %3446 = vst [vmem:[#allocation33_spill] sm:$0xff] %v2373_v41 }
  0xd3   : > { %v1535_v61 = vrot.slane %v477_v50, 6 }
  0xd4   : > { %v838_v45 = vpop.permute.xlu1 %837  ;;  %v1536_v2 = vrot.slane %v478_v54, 6 }
  0xd5   : > { %v848_v49 = vadd.f32 %v838_v45, %v832_v43 }
  0xd6   : > { %977 = vrot.lane.b32.xlu1 %v1902_v37, %s2081_s14 }
  0xd7   : > { %1911 = vtanh.f32 %v848_v49  ;;  %v1908_v51 = vpop.eup %1907  ;;  %v2379_v49 = vpop.permute.xlu0 %360 }
  0xd8   : > { %v1910_v56 = vpop.eup %1909  ;;  %v347_v58 = vrot.slane %v1908_v51, 6  ;;  %3449 = vst [vmem:[#allocation36_spill] sm:$0xff] %v2379_v49 }
  0xd9   : > { %v348_v59 = vrot.slane %v1910_v56, 6 }
  0xda   : > { %v2341_v60 = vmul.f32 %v347_v58, %v2241_v23 }
  0xdb   : > { %v2344_v63 = vmul.f32 %v348_v59, %v2244_v24  ;;  %v2082_v24 = vmov 6   ;;  %v3326_v59 = vmov 10  }
  0xdc   : > { %v842_v62 = vpop.permute.xlu1 %841  ;;  %v2347_v25 = vmul.f32 %v1535_v61, %v2341_v60  ;;  %1852 = vset.pattern.permute.xlu0 %v2082_v24  ;;  %1853 = vset.pattern.permute.xlu1 %v2082_v24 }
  0xdd   : > { %v1912_v3 = vpop.eup %1911  ;;  %v850_v6 = vadd.f32 %v842_v62, %v834_v57  ;;  %v2352_v31 = vmul.f32 %v1536_v2, %v2344_v63  ;;  %1854 = vset.pattern.permute.xlu2 %v2082_v24 }
  0xde   : > { %3444 = vst [vmem:[#allocation31_spill] sm:$0xff] %v2347_v25  ;;  %896 = vrot.lane.b32.xlu2 %v1912_v3, %s2080_s8  ;;  %861 = vrot.lane.b32.xlu1 %v1912_v3, %s2079_s30 }
  0xdf   : > { %3445 = vst [vmem:[#allocation32_spill] sm:$0xff] %v2352_v31  ;;  %1913 = vtanh.f32 %v850_v6 }
  0xe4   : > { %v2375_v42 = vpop.permute.xlu1 %364 }
  0xe5   : > { %v1914_v23 = vpop.eup %1913  ;;  %3447 = vst [vmem:[#allocation34_spill] sm:$0xff] %v2375_v42 }
  0xe6   : > { %975 = vrot.lane.b32.xlu2 %v1912_v3, %s2081_s14  ;;  %937 = vrot.lane.b32.xlu1 %v1900_v30, %s2076_s29 }
  0xe7   : > { %900 = vrot.lane.b32.xlu0 %v1914_v23, %s2080_s8 }
  0xee   : > { %979 = vrot.lane.b32.xlu2 %v1914_v23, %s2081_s14  ;;  %865 = vrot.lane.b32.xlu1 %v1914_v23, %s2079_s30 }
  0xef   : > { %859 = vrot.lane.b32.xlu0 %v1900_v30, %s2079_s30  ;;  %v967_v30 = vrot.slane %v2168_v1, 1 }
  0xf6   : > { %925 = vrot.lane.b32.xlu2 %v924_v34, %s2083_s16  ;;  %889 = vrot.lane.b32.xlu1 %v2168_v1, %s2084_s17 }
  0xf7   : > { %863 = vrot.lane.b32.xlu0 %v1902_v37, %s2079_s30 }
  0xfe   : > { %939 = vrot.lane.b32.xlu2 %v1912_v3, %s2076_s29 }
  0xff   : > { %1004 = vrot.lane.b32.xlu0 %v1003_v35, %s2085_s21  ;;  %s1683_s21 = scalar_lea.sflag [#allocation3], %s135_s4 }
 0x106   : > { %941 = vrot.lane.b32.xlu2 %v1902_v37, %s2076_s29  ;;  %v2377_v37 = vpop.permute.xlu2 %368 }
 0x107   : > { %943 = vrot.lane.b32.xlu0 %v1914_v23, %s2076_s29  ;;  %3448 = vst [vmem:[#allocation35_spill] sm:$0xff] %v2377_v37 }
 0x10e   : > { %968 = vrot.lane.b32.xlu2 %v967_v30, %s2086_s22 }
 0x10f   : > { %402 = vperm.xlu0 %1852, %v2168_v1  }
 0x117   : > { %414 = vperm.xlu0 %1852, %v2176_v4  }
 0x11f   : > { %1857 = vset.pattern.permute.xlu0 %v2087_v36 }
 0x120   : > { %492 = vperm.xlu0 %1857, %v2163_v0  }
 0x128   : > { %1859 = vset.pattern.permute.xlu0 %v3326_v59 }
 0x129   : > { %514 = vperm.xlu0 %1859, %v2181_v5  }
 0x138   : > { %v895_v43 = vpop.permute.xlu1 %894  ;;  %v897_v44 = vpop.permute.xlu2 %896 }
 0x139   : > { %v906_v3 = vmul.f32 %v895_v43, %v2168_v1  ;;  %v907_v6 = vmul.f32 %v897_v44, %v2181_v5 }
 0x13b   : > { %v911_v30 = vsel %vm910_vm1, %v906_v3, 0.0 }
 0x140   : > { %v974_v45 = vpop.permute.xlu1 %973  ;;  %v976_v46 = vpop.permute.xlu2 %975 }
 0x141   : > { %v985_v51 = vmul.f32 %v974_v45, %v2168_v1  ;;  %v986_v52 = vmul.f32 %v976_v46, %v2181_v5  ;;  %v899_v61 = vpop.permute.xlu0 %898  ;;  %v912_v45 = vsel %vm910_vm1, %v907_v6, 0.0 }
 0x142   : > { %v908_v24 = vmul.f32 %v899_v61, %v2163_v0 }
 0x143   : > { %v990_v57 = vsel %vm989_vm0, %v985_v51, 0.0  ;;  %v991_v58 = vsel %vm989_vm0, %v986_v52, 0.0  ;;  %v913_v51 = vadd.f32 %v912_v45, %v911_v30 }
 0x144   : > { %v992_v23 = vadd.f32 %v991_v58, %v990_v57  ;;  %v914_v46 = vsel %vm910_vm1, %v908_v24, 0.0 }
 0x148   : > { %v978_v50 = vpop.permute.xlu1 %977  ;;  %v980_v56 = vpop.permute.xlu2 %979 }
 0x149   : > { %v987_v54 = vmul.f32 %v978_v50, %v2163_v0  ;;  %v988_v2 = vmul.f32 %v980_v56, %v2176_v4  ;;  %v915_v56 = vadd.f32 %v914_v46, %v913_v51 }
 0x14b   : > { %v993_v62 = vsel %vm989_vm0, %v987_v54, 0.0  ;;  %v995_v35 = vsel %vm989_vm0, %v988_v2, 0.0 }
 0x14c   : > { %v994_v34 = vadd.f32 %v993_v62, %v992_v23 }
 0x14e   : > { %v996_v50 = vadd.f32 %v995_v35, %v994_v34 }
 0x150   : > { %v997_v7 = vrot.slane %v996_v50, 4  ;;  %v862_v61 = vpop.permute.xlu1 %861  ;;  %v2398_v46 = vpop.permute.xlu2 %925 }
 0x151   : > { %v872_v6 = vmul.f32 %v862_v61, %v2181_v5 }
 0x152   : > { %v998_v57 = vadd.f32 %v997_v7, %v996_v50 }
 0x153   : > { %v877_v7 = vsel %vm875_vm2, %v872_v6, 0.0 }
 0x154   : > { %v999_v23 = vrot.slane %v998_v57, 2 }
 0x156   : > { %v1000_v35 = vadd.f32 %v999_v23, %v998_v57 }
 0x158   : > { %v940_v57 = vpop.permute.xlu2 %939 }
 0x159   : > { %v901_v52 = vpop.permute.xlu0 %900 }
 0x15a   : > { %v909_v54 = vmul.f32 %v901_v52, %v2176_v4  ;;  %v1001_v52 = vrot.slane %v1000_v35, 1 }
 0x15c   : > { %v916_v43 = vsel %vm910_vm1, %v909_v54, 0.0 }
 0x15d   : > { %v917_v10 = vadd.f32 %v916_v43, %v915_v56  ;;  %v1002_v56 = vadd.f32 %v1001_v52, %v1000_v35 }
 0x15f   : > { %v918_v44 = vrot.slane %v917_v10, 4 }
 0x160   : > { %v942_v61 = vpop.permute.xlu2 %941 }
 0x161   : > { %v919_v58 = vadd.f32 %v918_v44, %v917_v10  ;;  %v860_v59 = vpop.permute.xlu0 %859  ;;  %v951_v6 = vmul.f32 %v942_v61, %v2163_v0 }
 0x162   : > { %v871_v2 = vmul.f32 %v860_v59, %v2168_v1 }
 0x163   : > { %v920_v62 = vrot.slane %v919_v58, 2 }
 0x164   : > { %v876_v34 = vsel %vm875_vm2, %v871_v2, 0.0 }
 0x165   : > { %v921_v3 = vadd.f32 %v920_v62, %v919_v58  ;;  %v878_v50 = vadd.f32 %v877_v7, %v876_v34  ;;  %v938_v58 = vpop.permute.xlu1 %937  ;;  %v950_v62 = vmul.f32 %v940_v57, %v2181_v5 }
 0x166   : > { %v949_v23 = vmul.f32 %v938_v58, %v2168_v1 }
 0x167   : > { %v922_v24 = vrot.slane %v921_v3, 1 }
 0x168   : > { %v954_v34 = vsel %vm953_vm3, %v949_v23, 0.0 }
 0x169   : > { %v864_v30 = vpop.permute.xlu0 %863  ;;  %v923_v45 = vadd.f32 %v922_v24, %v921_v3  ;;  %v3450_v3 = vmov 10   ;;  %v955_v24 = vsel %vm953_vm3, %v950_v62, 0.0 }
 0x16a   : > { %v873_v10 = vmul.f32 %v864_v30, %v2163_v0  ;;  %v957_v30 = vsel %vm953_vm3, %v951_v6, 0.0 }
 0x16b   : > { %v928_v51 = vadd.f32 %v2398_v46, %v923_v45 }
 0x16c   : > { %v879_v59 = vsel %vm875_vm2, %v873_v10, 0.0 }
 0x16d   : > { %v880_v54 = vadd.f32 %v879_v59, %v878_v50  ;;  %933 = vrot.lane.b32.xlu1 %v928_v51, %s2083_s16  ;;  %v866_v59 = vpop.permute.xlu1 %865 }
 0x16e   : > { %v874_v52 = vmul.f32 %v866_v59, %v2176_v4 }
 0x171   : > { %v2405_v43 = vpop.permute.xlu0 %1004 }
 0x172   : > { %v1007_v44 = vadd.f32 %v2405_v43, %v1002_v56 }
 0x174   : > { %1012 = vrot.lane.b32.xlu2 %v1007_v44, %s2083_s16  ;;  %v881_v44 = vsel %vm875_vm2, %v874_v52, 0.0 }
 0x175   : > { %406 = vperm.xlu1 %1853, %v2181_v5   ;;  %v882_v58 = vadd.f32 %v881_v44, %v880_v54 }
 0x177   : > { %v883_v62 = vrot.slane %v882_v58, 4 }
 0x179   : > { %v944_v2 = vpop.permute.xlu0 %943  ;;  %v884_v31 = vadd.f32 %v883_v62, %v882_v58 }
 0x17a   : > { %v952_v35 = vmul.f32 %v944_v2, %v2176_v4  ;;  %v2422_v2 = vpop.permute.xlu2 %968 }
 0x17c   : > { %410 = vperm.xlu2 %1854, %v2163_v0   ;;  %v959_v45 = vsel %vm953_vm3, %v952_v35, 0.0 }
 0x17d   : > { %1855 = vset.pattern.permute.xlu1 %v2087_v36 }
 0x17e   : > { %484 = vperm.xlu1 %1855, %v2168_v1  }
 0x184   : > { %1856 = vset.pattern.permute.xlu2 %v2087_v36  ;;  %v956_v36 = vadd.f32 %v955_v24, %v954_v34  ;;  %v885_v24 = vrot.slane %v884_v31, 2 }
 0x185   : > { %488 = vperm.xlu2 %1856, %v2181_v5  }
 0x186   : > { %v958_v7 = vadd.f32 %v957_v30, %v956_v36  ;;  %v886_v34 = vadd.f32 %v885_v24, %v884_v31  ;;  %v2090_v31 = vmov 9  }
 0x187   : > { %1863 = vset.pattern.permute.xlu0 %v2090_v31 }
 0x188   : > { %v960_v10 = vadd.f32 %v959_v45, %v958_v7  ;;  %v887_v35 = vrot.slane %v886_v34, 1  ;;  %v2425_v7 = vpop.permute.xlu1 %889 }
 0x18a   : > { %v961_v50 = vrot.slane %v960_v10, 4  ;;  %v888_v36 = vadd.f32 %v887_v35, %v886_v34 }
 0x18c   : > { %v962_v51 = vadd.f32 %v961_v50, %v960_v10  ;;  %v892_v10 = vadd.f32 %v2425_v7, %v888_v36 }
 0x18d   : > { %1858 = vset.pattern.permute.xlu2 %v3450_v3 }
 0x18e   : > { %v963_v56 = vrot.slane %v962_v51, 2 }
 0x190   : > { %v964_v57 = vadd.f32 %v963_v56, %v962_v51 }
 0x192   : > { %v965_v61 = vrot.slane %v964_v57, 1 }
 0x194   : > { %v966_v23 = vadd.f32 %v965_v61, %v964_v57 }
 0x196   : > { %v971_v6 = vadd.f32 %v2422_v2, %v966_v23 }
 0x198   : > { %1915 = vtanh.f32 %v971_v6 }
 0x19e   : > { %v1916_v30 = vpop.eup %1915 }
 0x19f   : > { %v1008_v45 = vmul.f32 1.442695, %v1916_v30 }
 0x1a1   : > { %1917 = vpow2.f32 %v1008_v45 }
 0x1a2   : > { %1919 = vtanh.f32 %v892_v10 }
 0x1a7   : > { %v1918_v54 = vpop.eup %1917 }
 0x1a8   : > { %v1010_v50 = vmul.f32 0.0, %v1918_v54  ;;  %v1920_v51 = vpop.eup %1919 }
 0x1a9   : > { %v929_v56 = vmul.f32 1.442695, %v1920_v51 }
 0x1ab   : > { %1921 = vpow2.f32 %v929_v56 }
 0x1b1   : > { %v1922_v57 = vpop.eup %1921 }
 0x1b2   : > { %v931_v58 = vmul.f32 0.0, %v1922_v57  ;;  %v2472_v57 = vpop.permute.xlu0 %402 }
 0x1b3   : > { %3453 = vst [vmem:[#allocation39_spill] sm:$0xff] %v2472_v57 }
 0x1ce   : > { %v1013_v59 = vpop.permute.xlu2 %1012 }
 0x1cf   : > { %v2428_v52 = vadd.f32 %v1013_v59, %v1010_v50 }
 0x1d1   : > { %v1045_v44 = vperm.slane %v2428_v52, 0 }
 0x1d3   : > { %1047 = vrot.lane.b32.xlu2 %v1045_v44, %s2089_s23  ;;  %v3328_v44 = vmov 11  }
 0x1d6   : > { %v2442_v24 = vpop.permute.xlu2 %410 }
 0x1d7   : > { %3452 = vst [vmem:[#allocation38_spill] sm:$0xff] %v2442_v24 }
 0x1db   : > { %510 = vperm.xlu2 %1858, %v2168_v1  }
 0x1df   : > { %v934_v61 = vpop.permute.xlu1 %933  ;;  %v2446_v35 = vpop.permute.xlu2 %488 }
 0x1e0   : > { %v2432_v62 = vadd.f32 %v934_v61, %v931_v58 }
 0x1e2   : > { %v1016_v23 = vperm.slane %v2432_v62, 0 }
 0x1e3   : > { %522 = vperm.xlu2 %1858, %v2176_v4  }
 0x1e4   : > { %1018 = vrot.lane.b32.xlu1 %v1016_v23, %s2089_s23  ;;  %v2478_v23 = vpop.permute.xlu0 %414 }
 0x1e5   : > { %3454 = vst [vmem:[#allocation40_spill] sm:$0xff] %v2478_v23 }
 0x1e7   : > { %v2440_v6 = vpop.permute.xlu1 %406 }
 0x1e8   : > { %3451 = vst [vmem:[#allocation37_spill] sm:$0xff] %v2440_v6 }
 0x1eb   : > { %1862 = vset.pattern.permute.xlu2 %v2090_v31 }
 0x1ec   : > { %496 = vperm.xlu1 %1855, %v2176_v4  }
 0x1f0   : > { %v2444_v34 = vpop.permute.xlu1 %484 }
 0x1f4   : > { %1860 = vset.pattern.permute.xlu1 %v3450_v3 }
 0x1f5   : > { %518 = vperm.xlu1 %1860, %v2163_v0  }
 0x1fd   : > { %1861 = vset.pattern.permute.xlu1 %v2090_v31 }
 0x1fe   : > { %534 = vperm.xlu1 %1861, %v2168_v1  }
 0x22d   : > { %v1048_v10 = vpop.permute.xlu2 %1047 }
 0x22e   : > { %v1051_v50 = vmul.f32 %v1048_v10, %v2181_v5  ;;  %v1050_v51 = vmul.f32 %v1048_v10, %v2168_v1  ;;  %v1053_v59 = vmul.f32 %v1048_v10, %v2176_v4  ;;  %v1052_v56 = vmul.f32 %v1048_v10, %v2163_v0 }
 0x235   : > { %v2470_v31 = vpop.permute.xlu2 %510 }
 0x23d   : > { %v2474_v58 = vpop.permute.xlu2 %522 }
 0x256   : > { %v1019_v30 = vpop.permute.xlu1 %1018 }
 0x257   : > { %v1023_v36 = vmul.f32 %v1019_v30, %v2163_v0  ;;  %v1022_v45 = vmul.f32 %v1019_v30, %v2181_v5  ;;  %v1021_v3 = vmul.f32 %v1019_v30, %v2168_v1  ;;  %v1024_v54 = vmul.f32 %v1019_v30, %v2176_v4 }
 0x259   : > { %1033 = vrot.lane.b32.xlu1 %v1023_v36, %s2076_s29  ;;  %1031 = vrot.lane.b32.xlu0 %v1022_v45, %s2076_s29  ;;  %v2482_v45 = vpop.permute.xlu0 %492 }
 0x25a   : > { %1029 = vrot.lane.b32.xlu2 %v1021_v3, %s2076_s29 }
 0x25e   : > { %v2476_v61 = vpop.permute.xlu1 %496 }
 0x261   : > { %1035 = vrot.lane.b32.xlu1 %v1024_v54, %s2076_s29  ;;  %1060 = vrot.lane.b32.xlu0 %v1051_v50, %s2079_s30  ;;  %v2485_v50 = vpop.permute.xlu0 %514 }
 0x262   : > { %1058 = vrot.lane.b32.xlu2 %v1050_v51, %s2079_s30 }
 0x267   : > { %v2480_v36 = vpop.permute.xlu1 %518 }
 0x269   : > { %538 = vperm.xlu1 %1861, %v2181_v5   ;;  %1064 = vrot.lane.b32.xlu0 %v1053_v59, %s2079_s30 }
 0x26a   : > { %1062 = vrot.lane.b32.xlu2 %v1052_v56, %s2079_s30 }
 0x270   : > { %v2487_v51 = vpop.permute.xlu1 %534 }
 0x271   : > { %1864 = vset.pattern.permute.xlu1 %v3328_v44  ;;  %546 = vperm.xlu0 %1863, %v2176_v4  }
 0x272   : > { %542 = vperm.xlu2 %1862, %v2163_v0   ;;  %576 = vperm.xlu1 %1864, %v2168_v1  }
 0x27a   : > { %1865 = vset.pattern.permute.xlu2 %v3328_v44 }
 0x2b4   : > { %v1030_v30 = vpop.permute.xlu2 %1029 }
 0x2b5   : > { %v1041_v3 = vadd.f32 %v1030_v30, %v2168_v1 }
 0x2bc   : > { %v1059_v10 = vpop.permute.xlu2 %1058 }
 0x2bd   : > { %v1070_v54 = vadd.f32 %v1059_v10, %v1041_v3 }
 0x2bf   : > { %1923 = vtanh.f32 %v1070_v54 }
 0x2c4   : > { %v1063_v47 = vpop.permute.xlu2 %1062 }
 0x2c5   : > { %v1924_v59 = vpop.eup %1923 }
 0x2c6   : > { %1185 = vrot.lane.b32.xlu2 %v1924_v59, %s2081_s14 }
 0x2cb   : > { %v1034_v56 = vpop.permute.xlu1 %1033  ;;  %v1032_v44 = vpop.permute.xlu0 %1031 }
 0x2cc   : > { %v1043_v25 = vadd.f32 %v1034_v56, %v2163_v0  ;;  %v1042_v30 = vadd.f32 %v1032_v44, %v2181_v5  ;;  %v376_v44 = vmul.f32 %v2294_v28, %v2375_v42  ;;  %v3457_v56 = vmov 3  }
 0x2ce   : > { %v1072_v33 = vadd.f32 %v1063_v47, %v1043_v25  ;;  %1114 = vrot.lane.b32.xlu2 %v1924_v59, %s2080_s8  ;;  %v3344_v47 = vmov 12   ;;  %v371_v25 = vmul.f32 %v2276_v9, %v2373_v41 }
 0x2cf   : > { %1869 = vset.pattern.permute.xlu0 %v3344_v47 }
 0x2d0   : > { %1925 = vtanh.f32 %v1072_v33 }
 0x2d3   : > { %v1061_v3 = vpop.permute.xlu0 %1060  ;;  %v1036_v26 = vpop.permute.xlu1 %1035 }
 0x2d4   : > { %v1071_v10 = vadd.f32 %v1061_v3, %v1042_v30  ;;  %v1044_v8 = vadd.f32 %v1036_v26, %v2176_v4  ;;  %v3347_v26 = vmov 13  }
 0x2d6   : > { %v1926_v54 = vpop.eup %1925  ;;  %1927 = vtanh.f32 %v1071_v10 }
 0x2d7   : > { %1118 = vrot.lane.b32.xlu2 %v1926_v54, %s2080_s8 }
 0x2db   : > { %v1065_v53 = vpop.permute.xlu0 %1064  ;;  %v2601_v21 = vpop.permute.xlu1 %538 }
 0x2dc   : > { %v1928_v20 = vpop.eup %1927  ;;  %v1073_v48 = vadd.f32 %v1065_v53, %v1044_v8  ;;  %v1224_v53 = vmul.f32 1.442695, %v2168_v1  ;;  %v373_v8 = vmul.f32 %v2282_v13, %v2379_v49 }
 0x2dd   : > { %1116 = vrot.lane.b32.xlu0 %v1928_v20, %s2080_s8  ;;  %1187 = vrot.lane.b32.xlu1 %v1928_v20, %s2081_s14 }
 0x2de   : > { %1929 = vtanh.f32 %v1073_v48  ;;  %v3456_v48 = vmov 4  }
 0x2df   : > { %1153 = vrot.lane.b32.xlu2 %v1924_v59, %s2076_s29  ;;  %1931 = vpow2.f32 %v1224_v53 }
 0x2e4   : > { %v1930_v33 = vpop.eup %1929 }
 0x2e5   : > { %1189 = vrot.lane.b32.xlu1 %v1926_v54, %s2081_s14  ;;  %1191 = vrot.lane.b32.xlu0 %v1930_v33, %s2081_s14  ;;  %v2539_v3 = vpop.eup %1931  ;;  %s1694_s14 = scalar_lea.hbm %s3323_s2, %s1770_s6 }
 0x2e6   : > { %s1698_s17 = sshll.u32 %s1694_s14, 4  ;;  %s1699_s17 = int_to_ptr.hbm [resolvable:$true] %s1698_s17 }
 0x2e7   : > { %1084 = vrot.lane.b32.xlu2 %v1928_v20, %s2079_s30  ;;  %s2021_s22 = sshra.s32 %s1699_s17, 4  ;;  %s2022_s22 = int_to_ptr.hbm [resolvable:$true] %s2021_s22 }
 0x2e8   : > { %s2023_s23 = scalar_lea.hbm %s2022_s22, 16  ;;  %p2028_p0 = scmp.lt.s32.totalorder %s2022_s22, %s3323_s2 }
 0x2e9   : > { %p2024_p11 = scmp.ne.s32.totalorder %s2022_s22, %s2023_s23  ;;  %p2029_p1 = scmp.lt.s32.totalorder %s2027_s26, %s2023_s23 }
 0x2eb   : > { %p2025_p12 = pnand %p2024_p11, %p2150_p5  ;;  %p2030_p2 = por %p2029_p1, %p2028_p0 }
 0x2ed   : > { %1120 = vrot.lane.b32.xlu1 %v1930_v33, %s2080_s8  ;;  %1155 = vrot.lane.b32.xlu0 %v1928_v20, %s2076_s29  ;;  %v3455_v20 = vmov 11   ;;  %p2026_p13 = pneg %p2025_p12 }
 0x2ef   : > { %1159 = vrot.lane.b32.xlu2 %v1930_v33, %s2076_s29  ;;  %p2031_p3 = pnand %p2030_p2, %p2026_p13 }
 0x2f5   : > { %1082 = vrot.lane.b32.xlu1 %v1924_v59, %s2079_s30  ;;  %1157 = vrot.lane.b32.xlu0 %v1926_v54, %s2076_s29  ;;  %v379_v59 = vadd.f32 %v373_v8, %v371_v25  ;;  %v1228_v8 = vsub.f32 0.0, %v2539_v3 }
 0x2f7   : > { %584 = vperm.xlu2 %1865, %v2163_v0  }
 0x2fd   : > { %1086 = vrot.lane.b32.xlu1 %v1926_v54, %s2079_s30  ;;  %1088 = vrot.lane.b32.xlu0 %v1930_v33, %s2079_s30  ;;  %v377_v54 = vmul.f32 %v2296_v29, %v2377_v37  ;;  %v378_v33 = vmul.f32 %v2302_v32, %v2377_v37  ;;  %v421_v37 = vmul.f32 %v2288_v16, %v2442_v24 }
 0x2ff   : > { %1867 = vset.pattern.permute.xlu2 %v3344_v47 }
 0x300   : > { %688 = vperm.xlu2 %1867, %v2181_v5  }
 0x305   : > { %580 = vperm.xlu1 %1864, %v2181_v5   ;;  %696 = vperm.xlu0 %1869, %v2176_v4  }
 0x308   : > { %1868 = vset.pattern.permute.xlu2 %v3455_v20 }
 0x309   : > { %588 = vperm.xlu2 %1868, %v2176_v4   ;;  %v374_v4 = vmul.f32 %v2284_v14, %v2379_v49  ;;  %v422_v49 = vmul.f32 %v2294_v28, %v2442_v24 }
 0x30d   : > { %1866 = vset.pattern.permute.xlu1 %v3344_v47  ;;  %1874 = vset.pattern.permute.xlu0 %v3347_v26  ;;  %v2545_v47 = vpop.permute.xlu2 %542 }
 0x30e   : > { %684 = vperm.xlu1 %1866, %v2168_v1  }
 0x311   : > { %1871 = vset.pattern.permute.xlu2 %v3456_v48  ;;  %v2094_v48 = vmov 14  }
 0x312   : > { %1265 = vperm.xlu2 %1871, %v2428_v52   ;;  %v375_v52 = vmul.f32 %v2288_v16, %v2375_v42  ;;  %v3458_v42 = vmov 13  }
 0x316   : > { %692 = vperm.xlu1 %1866, %v2163_v0   ;;  %v372_v0 = vmul.f32 %v2286_v15, %v2373_v41 }
 0x318   : > { %v388_v30 = vadd.f32 %v374_v4, %v372_v0  ;;  %v3345_v4 = vmov 16  }
 0x31a   : > { %1873 = vset.pattern.permute.xlu2 %v3347_v26  ;;  %v389_v10 = vadd.f32 %v388_v30, %v376_v44 }
 0x31b   : > { %626 = vperm.xlu2 %1873, %v2168_v1   ;;  %v380_v1 = vadd.f32 %v379_v59, %v375_v52  ;;  %v2555_v59 = vld [vmem:[%s3322_s1 + $0x10] sm:$0xff] }
 0x31d   : > { %v381_v53 = vadd.f32 %v380_v1, %v377_v54  ;;  %v2561_v1 = vld [vmem:[%s3322_s1] sm:$0xff] }
 0x31e   : > { %1870 = vset.pattern.permute.xlu1 %v3457_v56 }
 0x31f   : > { %1255 = vperm.xlu1 %1870, %v2432_v62   ;;  %v390_v62 = vadd.f32 %v389_v10, %v378_v33  ;;  %v382_v25 = vrot.slane %v381_v53, 4  ;;  %v419_v10 = vmul.f32 %v2282_v13, %v2440_v6  ;;  %v2569_v33 = vld [vmem:[%s3322_s1 + $0x18] sm:$0xff] }
 0x320   : > { %v2550_v44 = vpop.permute.xlu2 %1185 }
 0x321   : > { %v391_v52 = vrot.slane %v390_v62, 4  ;;  %v383_v0 = vadd.f32 %v382_v25, %v381_v53  ;;  %v417_v53 = vmul.f32 %v2276_v9, %v2472_v57  ;;  %v313_v25 = vmul.f32 %v2276_v9, %v2317_v55 }
 0x322   : > { %v1197_v24 = vmul.f32 %v2561_v1, %v2550_v44 }
 0x323   : > { %1876 = vset.pattern.permute.xlu2 %v2094_v48  ;;  %v384_v56 = vrot.slane %v383_v0, 2 }
 0x324   : > { %734 = vperm.xlu2 %1876, %v2181_v5   ;;  %v392_v5 = vadd.f32 %v391_v52, %v390_v62  ;;  %v418_v52 = vmul.f32 %v2286_v15, %v2472_v57 }
 0x325   : > { %v385_v54 = vadd.f32 %v384_v56, %v383_v0  ;;  %v425_v0 = vadd.f32 %v419_v10, %v417_v53  ;;  %v315_v56 = vmul.f32 %v2282_v13, %v2278_v11  ;;  %v316_v10 = vmul.f32 %v2284_v14, %v2278_v11 }
 0x326   : > { %v393_v30 = vrot.slane %v392_v5, 2  ;;  %v318_v53 = vmul.f32 %v2294_v28, %v2320_v27 }
 0x327   : > { %1872 = vset.pattern.permute.xlu1 %v3345_v4  ;;  %v317_v4 = vmul.f32 %v2288_v16, %v2320_v27  ;;  %v321_v57 = vadd.f32 %v315_v56, %v313_v25  ;;  %v426_v41 = vadd.f32 %v425_v0, %v421_v37  ;;  %v319_v25 = vmul.f32 %v2296_v29, %v2310_v39 }
 0x328   : > { %1238 = vperm.xlu1 %1872, %v1228_v8   ;;  %v420_v8 = vmul.f32 %v2284_v14, %v2440_v6  ;;  %v2576_v62 = vpop.permute.xlu2 %1114  ;;  %v424_v37 = vmul.f32 %v2302_v32, %v2478_v23 }
 0x32a   : > { %v434_v6 = vadd.f32 %v420_v8, %v418_v52  ;;  %v322_v8 = vadd.f32 %v321_v57, %v317_v4  ;;  %v320_v57 = vmul.f32 %v2302_v32, %v2310_v39 }
 0x32c   : > { %738 = vperm.xlu2 %1876, %v2555_v59   ;;  %v435_v11 = vadd.f32 %v434_v6, %v422_v49 }
 0x32e   : > { %v436_v6 = vadd.f32 %v435_v11, %v424_v37 }
 0x330   : > { %1875 = vset.pattern.permute.xlu1 %v2094_v48  ;;  %v394_v48 = vadd.f32 %v393_v30, %v392_v5  ;;  %v314_v5 = vmul.f32 %v2286_v15, %v2317_v55  ;;  %v386_v30 = vrot.slane %v385_v54, 1  ;;  %v437_v0 = vrot.slane %v436_v6, 4 }
 0x331   : > { %730 = vperm.xlu1 %1875, %v2561_v1   ;;  %v2603_v18 = vpop.permute.xlu2 %1118 }
 0x332   : > { %v395_v26 = vrot.slane %v394_v48, 1  ;;  %v330_v55 = vadd.f32 %v316_v10, %v314_v5  ;;  %v387_v17 = vadd.f32 %v386_v30, %v385_v54  ;;  %v2614_v5 = vpop.permute.xlu0 %546 }
 0x334   : > { %742 = vperm.xlu2 %1876, %v2569_v33   ;;  %v396_v52 = vadd.f32 %v395_v26, %v394_v48  ;;  %v331_v27 = vadd.f32 %v330_v55, %v318_v53  ;;  %v323_v26 = vadd.f32 %v322_v8, %v319_v25  ;;  %v438_v53 = vadd.f32 %v437_v0, %v436_v6  ;;  %v2632_v0 = vld [vmem:[%s3322_s1 + $0x8] sm:$0xff] }
 0x335   : > { %3462 = vst [vmem:[#allocation43_spill] sm:$0xff] %v2632_v0 }
 0x336   : > { %v398_v49 = vadd.f32 %v396_v52, %v2280_v12  ;;  %v332_v4 = vadd.f32 %v331_v27, %v320_v57  ;;  %v324_v48 = vrot.slane %v323_v26, 4  ;;  %v3460_v27 = vmov 12  }
 0x337   : > { %v439_v37 = vrot.slane %v438_v53, 2 }
 0x338   : > { %v333_v56 = vrot.slane %v332_v4, 4 }
 0x339   : > { %1877 = vset.pattern.permute.xlu1 %v3458_v42  ;;  %v423_v42 = vmul.f32 %v2296_v29, %v2478_v23  ;;  %v2618_v10 = vpop.permute.xlu2 %1153  ;;  %v440_v6 = vadd.f32 %v439_v37, %v438_v53 }
 0x33a   : > { %634 = vperm.xlu1 %1877, %v2555_v59   ;;  %v334_v11 = vadd.f32 %v333_v56, %v332_v4 }
 0x33b   : > { %v427_v54 = vadd.f32 %v426_v41, %v423_v42  ;;  %v2616_v41 = vpop.permute.xlu1 %576 }
 0x33c   : > { %1880 = vset.pattern.permute.xlu2 %v3455_v20  ;;  %v397_v20 = vadd.f32 %v387_v17, %v2280_v12  ;;  %v325_v17 = vadd.f32 %v324_v48, %v323_v26 }
 0x33d   : > { %v428_v55 = vrot.slane %v427_v54, 4 }
 0x33e   : > { %1933 = vtanh.f32 %v397_v20  ;;  %v326_v25 = vrot.slane %v325_v17, 2  ;;  %v335_v20 = vrot.slane %v334_v11, 2 }
 0x33f   : > { %1935 = vtanh.f32 %v398_v49  ;;  %v429_v30 = vadd.f32 %v428_v55, %v427_v54 }
 0x340   : > { %v327_v26 = vadd.f32 %v326_v25, %v325_v17  ;;  %v336_v48 = vadd.f32 %v335_v20, %v334_v11 }
 0x341   : > { %v430_v42 = vrot.slane %v429_v30, 2  ;;  %v2627_v4 = vpop.permute.xlu2 %1084 }
 0x342   : > { %638 = vperm.xlu1 %1877, %v2569_v33   ;;  %v328_v39 = vrot.slane %v327_v26, 1  ;;  %v337_v17 = vrot.slane %v336_v48, 1 }
 0x343   : > { %v431_v23 = vadd.f32 %v430_v42, %v429_v30  ;;  %v441_v30 = vrot.slane %v440_v6, 1 }
 0x344   : > { %v2620_v8 = vpop.eup %1933  ;;  %v329_v19 = vadd.f32 %v328_v39, %v327_v26  ;;  %v338_v29 = vadd.f32 %v337_v17, %v336_v48 }
 0x345   : > { %3459 = vst [vmem:[#allocation41_spill] sm:$0xff] %v2620_v8  ;;  %v2623_v52 = vpop.eup %1935  ;;  %v445_v57 = vmul.f32 1.442695, %v2620_v8 }
 0x346   : > { %3461 = vst [vmem:[#allocation42_spill] sm:$0xff] %v2623_v52  ;;  %v447_v49 = vmul.f32 1.442695, %v2623_v52 }
 0x347   : > { %1937 = vpow2.f32 %v445_v57 }
 0x348   : > { %1939 = vpow2.f32 %v447_v49  ;;  %v1126_v49 = vmul.f32 %v2561_v1, %v2576_v62 }
 0x34a   : > { %1879 = vset.pattern.permute.xlu1 %v3460_v27  ;;  %v432_v27 = vrot.slane %v431_v23, 1  ;;  %v1131_v62 = vsel %vm1130_vm5, %v1126_v49, 0.0 }
 0x34c   : > { %v433_v57 = vadd.f32 %v432_v27, %v431_v23 }
 0x34d   : > { %v1938_v42 = vpop.eup %1937 }
 0x34e   : > { %v1940_v20 = vpop.eup %1939  ;;  %v451_v27 = vrot.slane %v1938_v42, 6  ;;  %v443_v26 = vadd.f32 %v433_v57, %v2280_v12 }
 0x34f   : > { %v1188_v54 = vpop.permute.xlu1 %1187  ;;  %v1117_v55 = vpop.permute.xlu0 %1116 }
 0x350   : > { %v1198_v56 = vmul.f32 %v2632_v0, %v1188_v54  ;;  %v1127_v11 = vmul.f32 %v2632_v0, %v1117_v55  ;;  %v1202_v54 = vsel %vm1201_vm4, %v1197_v24, 0.0  ;;  %v452_v24 = vrot.slane %v1940_v20, 6  ;;  %v2666_v20 = vld [vmem:[%s2238_s7 + $0x8] sm:$0xff] }
 0x351   : > { %3465 = vst [vmem:[#allocation46_spill] sm:$0xff] %v2666_v20 }
 0x352   : > { %v1203_v53 = vsel %vm1201_vm4, %v1198_v56, 0.0  ;;  %v442_v56 = vadd.f32 %v441_v30, %v440_v6  ;;  %v1132_v55 = vsel %vm1130_vm5, %v1127_v11, 0.0  ;;  %v339_v6 = vadd.f32 %v329_v19, %v2280_v12 }
 0x353   : > { %v1204_v32 = vadd.f32 %v1203_v53, %v1202_v54  ;;  %v1133_v48 = vadd.f32 %v1132_v55, %v1131_v62  ;;  %v2657_v53 = vld [vmem:[%s2238_s7] sm:$0xff]  ;;  %v2669_v19 = vmul.f32 %v2666_v20, %v452_v24 }
 0x354   : > { %v444_v17 = vadd.f32 %v442_v56, %v2280_v12  ;;  %3463 = vst [vmem:[#allocation44_spill] sm:$0xff] %v2657_v53  ;;  %v2660_v11 = vmul.f32 %v2657_v53, %v451_v27  ;;  %v1165_v53 = vmul.f32 %v2561_v1, %v2618_v10 }
 0x355   : > { %3466 = vst [vmem:[#allocation47_spill] sm:$0xff] %v2669_v19 }
 0x356   : > { %3464 = vst [vmem:[#allocation45_spill] sm:$0xff] %v2660_v11  ;;  %v2677_v57 = vadd.f32 %v2660_v11, %v443_v26  ;;  %v2680_v49 = vadd.f32 %v2669_v19, %v444_v17 }
 0x357   : > { %v1190_v25 = vpop.permute.xlu1 %1189  ;;  %v1192_v37 = vpop.permute.xlu0 %1191 }
 0x358   : > { %v1199_v44 = vmul.f32 %v2555_v59, %v1190_v25  ;;  %v1200_v22 = vmul.f32 %v2569_v33, %v1192_v37  ;;  %v1128_v25 = vmul.f32 %v2555_v59, %v2603_v18  ;;  %v2649_v37 = vpop.permute.xlu2 %1159  ;;  %v2663_v18 = vadd.f32 %v2341_v60, %v339_v6 }
 0x359   : > { %v2690_v27 = vperm.slane %v2677_v57, 3  ;;  %v1168_v20 = vmul.f32 %v2569_v33, %v2649_v37 }
 0x35a   : > { %v1205_v23 = vsel %vm1201_vm4, %v1199_v44, 0.0  ;;  %v1207_v39 = vsel %vm1201_vm4, %v1200_v22, 0.0 }
 0x35b   : > { %v1206_v14 = vadd.f32 %v1205_v23, %v1204_v32  ;;  %v340_v32 = vadd.f32 %v338_v29, %v2280_v12  ;;  %v1134_v12 = vsel %vm1130_vm5, %v1128_v25, 0.0  ;;  %v2684_v23 = vperm.slane %v2663_v18, 2 }
 0x35c   : > { %v1135_v60 = vadd.f32 %v1134_v12, %v1133_v48  ;;  %v2693_v25 = vperm.slane %v2680_v49, 3  ;;  %v555_v13 = vmul.f32 %v2690_v27, %v2545_v47 }
 0x35d   : > { %v1208_v30 = vadd.f32 %v1207_v39, %v1206_v14  ;;  %v2672_v14 = vadd.f32 %v2344_v63, %v340_v32  ;;  %v503_v39 = vmul.f32 %v2684_v23, %v2446_v35  ;;  %v501_v6 = vmul.f32 %v2684_v23, %v2444_v34 }
 0x35e   : > { %v556_v28 = vmul.f32 %v2693_v25, %v2545_v47 }
 0x35f   : > { %v1209_v42 = vrot.slane %v1208_v30, 4  ;;  %v1121_v22 = vpop.permute.xlu1 %1120  ;;  %v2687_v63 = vperm.slane %v2672_v14, 2  ;;  %v527_v11 = vadd.f32 %v2485_v50, %v503_v39 }
 0x360   : > { %v1129_v29 = vmul.f32 %v2569_v33, %v1121_v22  ;;  %v2701_v48 = vpop.permute.xlu2 %584  ;;  %v552_v22 = vmul.f32 %v2693_v25, %v2487_v51 }
 0x361   : > { %v1210_v54 = vadd.f32 %v1209_v42, %v1208_v30  ;;  %v504_v26 = vmul.f32 %v2687_v63, %v2446_v35  ;;  %v551_v30 = vmul.f32 %v2690_v27, %v2487_v51  ;;  %v502_v17 = vmul.f32 %v2687_v63, %v2444_v34 }
 0x362   : > { %v1136_v44 = vsel %vm1130_vm5, %v1129_v29, 0.0  ;;  %v525_v29 = vadd.f32 %v2470_v31, %v501_v6 }
 0x363   : > { %v1211_v56 = vrot.slane %v1210_v54, 2  ;;  %v1137_v55 = vadd.f32 %v1136_v44, %v1135_v60  ;;  %v506_v60 = vmul.f32 %v2687_v63, %v2482_v45  ;;  %v553_v44 = vmul.f32 %v2690_v27, %v2601_v21 }
 0x364   : > { %v528_v6 = vadd.f32 %v2485_v50, %v504_v26  ;;  %v559_v52 = vadd.f32 %v551_v30, %v525_v29 }
 0x365   : > { %v1212_v24 = vadd.f32 %v1211_v56, %v1210_v54  ;;  %v1138_v62 = vrot.slane %v1137_v55, 4  ;;  %v505_v54 = vmul.f32 %v2684_v23, %v2482_v45  ;;  %v526_v56 = vadd.f32 %v2470_v31, %v502_v17 }
 0x366   : > { %v561_v16 = vadd.f32 %v553_v44, %v527_v11  ;;  %1941 = vtanh.f32 %v559_v52 }
 0x367   : > { %v1139_v32 = vadd.f32 %v1138_v62, %v1137_v55  ;;  %v2707_v42 = vpop.permute.xlu1 %1082  ;;  %v1213_v12 = vrot.slane %v1212_v24, 1  ;;  %v554_v62 = vmul.f32 %v2693_v25, %v2601_v21  ;;  %v560_v40 = vadd.f32 %v552_v22, %v526_v56 }
 0x368   : > { %v529_v17 = vadd.f32 %v2480_v36, %v505_v54  ;;  %v2733_v29 = vpop.permute.xlu2 %688 }
 0x369   : > { %v1140_v55 = vrot.slane %v1139_v32, 2  ;;  %v1214_v19 = vadd.f32 %v1213_v12, %v1212_v24  ;;  %v530_v24 = vadd.f32 %v2480_v36, %v506_v60  ;;  %v562_v12 = vadd.f32 %v554_v62, %v528_v6 }
 0x36a   : > { %v563_v39 = vadd.f32 %v555_v13, %v529_v17  ;;  %1943 = vtanh.f32 %v560_v40 }
 0x36b   : > { %v1141_v8 = vadd.f32 %v1140_v55, %v1139_v32  ;;  %v1215_v31 = vadd.f32 %v1214_v19, %v2405_v43  ;;  %v564_v26 = vadd.f32 %v556_v28, %v530_v24  ;;  %1945 = vtanh.f32 %v561_v16 }
 0x36c   : > { %1947 = vtanh.f32 %v562_v12  ;;  %v2736_v36 = vpop.eup %1941 }
 0x36d   : > { %1220 = vrot.lane.b32.xlu0 %v1215_v31, %s2083_s16  ;;  %v1142_v50 = vrot.slane %v1141_v8, 1  ;;  %1949 = vtanh.f32 %v563_v39  ;;  %v591_v52 = vmul.f32 %v2736_v36, %v2616_v41  ;;  %v2797_v15 = vmul.f32 %v2736_v36, %v2736_v36 }
 0x36e   : > { %1951 = vtanh.f32 %v564_v26 }
 0x36f   : > { %v2731_v30 = vpop.permute.xlu1 %1086  ;;  %v1143_v32 = vadd.f32 %v1142_v50, %v1141_v8  ;;  %v2096_v50 = vmov 15  }
 0x370   : > { %v2738_v11 = vpop.eup %1943  ;;  %v2759_v54 = vpop.permute.xlu2 %588 }
 0x371   : > { %v1144_v43 = vadd.f32 %v1143_v32, %v2398_v46  ;;  %v2741_v13 = vpop.eup %1945  ;;  %v592_v19 = vmul.f32 %v2738_v11, %v2616_v41 }
 0x372   : > { %3467 = vst [vmem:[#allocation48_spill] sm:$0xff] %v2741_v13  ;;  %v2743_v28 = vpop.eup %1947  ;;  %v701_v39 = vmul.f32 %v2741_v13, %v2733_v29 }
 0x373   : > { %3468 = vst [vmem:[#allocation49_spill] sm:$0xff] %v2743_v28  ;;  %v2747_v8 = vpop.eup %1949  ;;  %v702_v26 = vmul.f32 %v2743_v28, %v2733_v29 }
 0x374   : > { %v2757_v22 = vpop.eup %1951  ;;  %v595_v60 = vmul.f32 %v2747_v8, %v2701_v48 }
 0x375   : > { %1149 = vrot.lane.b32.xlu0 %v1144_v43, %s2083_s16  ;;  %v596_v44 = vmul.f32 %v2757_v22, %v2701_v48  ;;  %s1696_s16 = sshll.u32 %s137_s13, 4  ;;  %s1697_s16 = int_to_ptr.vmem [resolvable:$true] %s1696_s16 }
 0x377   : > { %v2745_v40 = vpop.permute.xlu1 %580 }
 0x378   : > { %v593_v16 = vmul.f32 %v2741_v13, %v2745_v40  ;;  %v594_v46 = vmul.f32 %v2743_v28, %v2745_v40  ;;  %v1266_v17 = vpop.permute.xlu2 %1265 }
 0x37a   : > { %v599_v56 = vadd.f32 %v593_v16, %v591_v52  ;;  %v608_v55 = vadd.f32 %v594_v46, %v592_v19  ;;  %v1156_v19 = vpop.permute.xlu0 %1155 }
 0x37c   : > { %v2765_v62 = vadd.f32 %v599_v56, %v595_v60  ;;  %v2767_v6 = vadd.f32 %v608_v55, %v596_v44  ;;  %v3473_v55 = vmov 16  }
 0x37d   : > { %630 = vperm.xlu0 %1874, %v2632_v0  }
 0x37e   : > { %3469 = vst [vmem:[#allocation50_spill] sm:$0xff] %v2767_v6 }
 0x380   : > { %v2770_v31 = vpop.permute.xlu1 %684  ;;  %v2791_v56 = vpop.permute.xlu2 %626 }
 0x381   : > { %v699_v24 = vmul.f32 %v2736_v36, %v2770_v31  ;;  %v700_v12 = vmul.f32 %v2738_v11, %v2770_v31  ;;  %3472 = vst [vmem:[#allocation53_spill] sm:$0xff] %v2791_v56 }
 0x383   : > { %v707_v46 = vadd.f32 %v701_v39, %v699_v24  ;;  %v716_v52 = vadd.f32 %v702_v26, %v700_v12  ;;  %v2801_v24 = vmul.f32 %v2738_v11, %v2738_v11  ;;  %v2805_v12 = vmul.f32 %v2747_v8, %v2747_v8  ;;  %v1158_v26 = vpop.permute.xlu0 %1157 }
 0x384   : > { %v2809_v39 = vmul.f32 %v2757_v22, %v2757_v22 }
 0x385   : > { %1878 = vset.pattern.permute.xlu0 %v2096_v50  ;;  %v796_v9 = vsub.f32 1.0, %v2801_v24 }
 0x386   : > { %618 = vperm.xlu0 %1878, %v2561_v1  }
 0x388   : > { %v2781_v32 = vpop.permute.xlu1 %692 }
 0x389   : > { %v703_v43 = vmul.f32 %v2747_v8, %v2781_v32  ;;  %v704_v16 = vmul.f32 %v2757_v22, %v2781_v32 }
 0x38b   : > { %v2787_v60 = vadd.f32 %v707_v46, %v703_v43  ;;  %v2789_v44 = vadd.f32 %v716_v52, %v704_v16  ;;  %v1267_v43 = vrot.slane %v1266_v17, 5  ;;  %v1166_v16 = vmul.f32 %v2632_v0, %v1156_v19 }
 0x38c   : > { %v2814_v46 = vmul.f32 %v2741_v13, %v2741_v13  ;;  %v795_v52 = vsub.f32 1.0, %v2797_v15  ;;  %v1167_v17 = vmul.f32 %v2555_v59, %v1158_v26  ;;  %v790_v19 = vmul.f32 %v2743_v28, %v2743_v28 }
 0x38d   : > { %3470 = vst [vmem:[#allocation51_spill] sm:$0xff] %v2787_v60  ;;  %v1270_v15 = vsub.f32 %v2680_v49, %v1267_v43  ;;  %v1171_v10 = vsel %vm1169_vm6, %v1166_v16, 0.0  ;;  %v1094_v26 = vmul.f32 %v2561_v1, %v2707_v42  ;;  %v1095_v16 = vmul.f32 %v2632_v0, %v2627_v4 }
 0x38e   : > { %3471 = vst [vmem:[#allocation52_spill] sm:$0xff] %v2789_v44  ;;  %1881 = vset.pattern.permute.xlu0 %v3473_v55  ;;  %v1269_v55 = vsub.f32 %v2677_v57, %v1267_v43  ;;  %v797_v44 = vsub.f32 1.0, %v2814_v46  ;;  %v1173_v1 = vsel %vm1169_vm6, %v1167_v17, 0.0  ;;  %v798_v42 = vsub.f32 1.0, %v790_v19 }
 0x38f   : > { %1643 = vperm.xlu0 %1881, %v2539_v3   ;;  %v1099_v17 = vsel %vm1098_vm7, %v1094_v26, 0.0  ;;  %v1096_v4 = vmul.f32 %v2555_v59, %v2731_v30 }
 0x391   : > { %v1256_v50 = vpop.permute.xlu1 %1255 }
 0x392   : > { %v1257_v3 = vrot.slane %v1256_v50, 6  ;;  %v2823_v50 = vpop.permute.xlu2 %734 }
 0x393   : > { %v747_v59 = vmul.f32 %v2741_v13, %v2823_v50  ;;  %v748_v30 = vmul.f32 %v2743_v28, %v2823_v50 }
 0x394   : > { %v1259_v24 = vsub.f32 %v2663_v18, %v1257_v3  ;;  %v1260_v38 = vsub.f32 %v2672_v14, %v1257_v3  ;;  %v1170_v14 = vsel %vm1169_vm6, %v1165_v53, 0.0  ;;  %v1175_v53 = vsel %vm1169_vm6, %v1168_v20, 0.0 }
 0x395   : > { %v1172_v46 = vadd.f32 %v1171_v10, %v1170_v14 }
 0x39a   : > { %v2836_v56 = vpop.permute.xlu1 %1238 }
 0x39b   : > { %3474 = vst [vmem:[#allocation54_spill] sm:$0xff] %v2836_v56  ;;  %v2840_v57 = vmul.f32 %v1259_v24, %v2836_v56  ;;  %v2843_v49 = vmul.f32 %v1260_v38, %v2836_v56  ;;  %v2846_v18 = vmul.f32 %v1269_v55, %v2836_v56  ;;  %v2849_v37 = vmul.f32 %v1270_v15, %v2836_v56 }
 0x39d   : > { %3475 = vst [vmem:[#allocation55_spill] sm:$0xff] %v2840_v57  ;;  %v2854_v43 = vperm.slane %v2840_v57, 2  ;;  %v2857_v3 = vperm.slane %v2843_v49, 2  ;;  %v2860_v38 = vperm.slane %v2846_v18, 3  ;;  %v2863_v55 = vperm.slane %v2849_v37, 3 }
 0x39e   : > { %3476 = vst [vmem:[#allocation56_spill] sm:$0xff] %v2843_v49 }
 0x39f   : > { %3477 = vst [vmem:[#allocation57_spill] sm:$0xff] %v2846_v18  ;;  %v1275_v19 = vmul.f32 %v2854_v43, %v2444_v34  ;;  %v1276_v15 = vmul.f32 %v2857_v3, %v2444_v34  ;;  %v1277_v24 = vmul.f32 %v2854_v43, %v2446_v35  ;;  %v1174_v18 = vadd.f32 %v1173_v1, %v1172_v46  ;;  %v739_v1 = vpop.permute.xlu2 %738 }
 0x3a0   : > { %3478 = vst [vmem:[#allocation58_spill] sm:$0xff] %v2849_v37  ;;  %v1278_v37 = vmul.f32 %v2857_v3, %v2446_v35  ;;  %v1279_v20 = vmul.f32 %v2854_v43, %v2482_v45  ;;  %v1280_v10 = vmul.f32 %v2857_v3, %v2482_v45  ;;  %v1285_v26 = vmul.f32 %v2860_v38, %v2487_v51 }
 0x3a1   : > { %3479 = vst [vmem:[#allocation59_spill] sm:$0xff] %v2854_v43  ;;  %v1286_v34 = vmul.f32 %v2863_v55, %v2487_v51  ;;  %v1287_v14 = vmul.f32 %v2860_v38, %v2601_v21  ;;  %v1288_v35 = vmul.f32 %v2863_v55, %v2601_v21  ;;  %v1289_v45 = vmul.f32 %v2860_v38, %v2545_v47 }
 0x3a2   : > { %3480 = vst [vmem:[#allocation60_spill] sm:$0xff] %v2857_v3  ;;  %v1290_v46 = vmul.f32 %v2863_v55, %v2545_v47  ;;  %v1293_v49 = vadd.f32 %v1285_v26, %v1275_v19  ;;  %v749_v28 = vmul.f32 %v2747_v8, %v739_v1  ;;  %v750_v60 = vmul.f32 %v2757_v22, %v739_v1 }
 0x3a3   : > { %3481 = vst [vmem:[#allocation61_spill] sm:$0xff] %v2860_v38  ;;  %v731_v51 = vpop.permute.xlu1 %730  ;;  %v1294_v57 = vadd.f32 %v1286_v34, %v1276_v15  ;;  %v1295_v56 = vadd.f32 %v1287_v14, %v1277_v24  ;;  %v1296_v3 = vadd.f32 %v1288_v35, %v1278_v37  ;;  %v1297_v13 = vadd.f32 %v1289_v45, %v1279_v20 }
 0x3a4   : > { %3482 = vst [vmem:[#allocation62_spill] sm:$0xff] %v2863_v55  ;;  %v745_v21 = vmul.f32 %v2736_v36, %v731_v51  ;;  %v746_v43 = vmul.f32 %v2738_v11, %v731_v51  ;;  %v1298_v0 = vadd.f32 %v1290_v46, %v1280_v10  ;;  %v2903_v6 = vmul.f32 %v1293_v49, %v795_v52  ;;  %v1089_v10 = vpop.permute.xlu0 %1088 }
 0x3a5   : > { %v2905_v38 = vmul.f32 %v1294_v57, %v796_v9  ;;  %v2907_v19 = vmul.f32 %v1295_v56, %v797_v44  ;;  %v2909_v15 = vmul.f32 %v1296_v3, %v798_v42  ;;  %v1100_v37 = vsel %vm1098_vm7, %v1095_v16, 0.0 }
 0x3a6   : > { %v753_v47 = vadd.f32 %v747_v59, %v745_v21  ;;  %v762_v55 = vadd.f32 %v748_v30, %v746_v43  ;;  %v1176_v24 = vadd.f32 %v1175_v53, %v1174_v18  ;;  %v1102_v20 = vsel %vm1098_vm7, %v1096_v4, 0.0 }
 0x3a7   : > { %v3483_v52 = vsub.f32 1.0, %v2805_v12  ;;  %v3484_v57 = vsub.f32 1.0, %v2809_v39  ;;  %v1101_v56 = vadd.f32 %v1100_v37, %v1099_v17  ;;  %v1403_v49 = vmul.f32 %v2903_v6, %v731_v51 }
 0x3a8   : > { %v2913_v26 = vadd.f32 %v753_v47, %v749_v28  ;;  %v2915_v34 = vadd.f32 %v762_v55, %v750_v60  ;;  %v1404_v18 = vmul.f32 %v2905_v38, %v731_v51  ;;  %v1405_v42 = vmul.f32 %v2907_v19, %v2823_v50 }
 0x3a9   : > { %v2919_v9 = vmul.f32 %v1297_v13, %v3483_v52  ;;  %v2923_v44 = vmul.f32 %v1298_v0, %v3484_v57  ;;  %v1406_v28 = vmul.f32 %v2909_v15, %v2823_v50  ;;  %v1177_v60 = vrot.slane %v1176_v24, 4 }
 0x3aa   : > { %v1103_v43 = vadd.f32 %v1102_v20, %v1101_v56  ;;  %v1097_v13 = vmul.f32 %v2569_v33, %v1089_v10  ;;  %v1411_v39 = vadd.f32 %v1405_v42, %v1403_v49  ;;  %v1309_v55 = vmul.f32 %v2903_v6, %v2616_v41 }
 0x3ab   : > { %v1407_v12 = vmul.f32 %v2919_v9, %v739_v1  ;;  %v1408_v0 = vmul.f32 %v2923_v44, %v739_v1  ;;  %v1420_v3 = vadd.f32 %v1406_v28, %v1404_v18  ;;  %v1310_v16 = vmul.f32 %v2905_v38, %v2616_v41 }
 0x3ac   : > { %v1104_v50 = vsel %vm1098_vm7, %v1097_v13, 0.0  ;;  %v1311_v33 = vmul.f32 %v2907_v19, %v2745_v40  ;;  %v1312_v4 = vmul.f32 %v2909_v15, %v2745_v40  ;;  %v1178_v14 = vadd.f32 %v1177_v60, %v1176_v24 }
 0x3ad   : > { %v2938_v53 = vadd.f32 %v1411_v39, %v1407_v12  ;;  %v2940_v17 = vadd.f32 %v1420_v3, %v1408_v0  ;;  %v1105_v35 = vadd.f32 %v1104_v50, %v1103_v43  ;;  %v1313_v59 = vmul.f32 %v2919_v9, %v2701_v48 }
 0x3ae   : > { %v1314_v41 = vmul.f32 %v2923_v44, %v2701_v48  ;;  %v1317_v30 = vadd.f32 %v1311_v33, %v1309_v55  ;;  %v1326_v1 = vadd.f32 %v1312_v4, %v1310_v16  ;;  %v1377_v45 = vmul.f32 %v2903_v6, %v2770_v31  ;;  %v2985_v33 = vpop.permute.xlu0 %696 }
 0x3af   : > { %v1378_v46 = vmul.f32 %v2905_v38, %v2770_v31  ;;  %v1379_v40 = vmul.f32 %v2907_v19, %v2733_v29  ;;  %v1380_v47 = vmul.f32 %v2909_v15, %v2733_v29  ;;  %v1179_v37 = vrot.slane %v1178_v14, 2 }
 0x3b0   : > { %v2955_v51 = vadd.f32 %v1317_v30, %v1313_v59  ;;  %v2957_v21 = vadd.f32 %v1326_v1, %v1314_v41  ;;  %v1106_v48 = vrot.slane %v1105_v35, 4  ;;  %v1381_v24 = vmul.f32 %v2919_v9, %v2781_v32  ;;  %v3485_v59 = vld [vmem:[#allocation50_spill] sm:$0xff]  ;;  %v3486_v30 = vld [vmem:[#allocation51_spill] sm:$0xff] }
 0x3b1   : > { %v1382_v20 = vmul.f32 %v2923_v44, %v2781_v32  ;;  %v1385_v10 = vadd.f32 %v1379_v40, %v1377_v45  ;;  %v1394_v31 = vadd.f32 %v1380_v47, %v1378_v46  ;;  %v1180_v52 = vadd.f32 %v1179_v37, %v1178_v14  ;;  %v3487_v45 = vld [vmem:[#allocation52_spill] sm:$0xff] }
 0x3b2   : > { %v1107_v57 = vadd.f32 %v1106_v48, %v1105_v35  ;;  %v507_v29 = vmul.f32 %v2684_v23, %v2476_v61  ;;  %v508_v28 = vmul.f32 %v2687_v63, %v2476_v61  ;;  %v557_v60 = vmul.f32 %v2690_v27, %v2614_v5 }
 0x3b3   : > { %v2967_v56 = vadd.f32 %v1385_v10, %v1381_v24  ;;  %v2969_v49 = vadd.f32 %v1394_v31, %v1382_v20  ;;  %v1181_v42 = vrot.slane %v1180_v52, 1  ;;  %v558_v12 = vmul.f32 %v2693_v25, %v2614_v5 }
 0x3b4   : > { %v1108_v18 = vrot.slane %v1107_v57, 2  ;;  %v531_v13 = vadd.f32 %v2474_v58, %v507_v29  ;;  %v532_v0 = vadd.f32 %v2474_v58, %v508_v28 }
 0x3b5   : > { %v1182_v43 = vadd.f32 %v1181_v42, %v1180_v52  ;;  %v3488_v42 = vld [vmem:[#allocation43_spill] sm:$0xff] }
 0x3b6   : > { %v1109_v32 = vadd.f32 %v1108_v18, %v1107_v57  ;;  %v565_v39 = vadd.f32 %v557_v60, %v531_v13  ;;  %v566_v23 = vadd.f32 %v558_v12, %v532_v0  ;;  %v1226_v29 = vmul.f32 1.442695, %v3488_v42  ;;  %v3490_v13 = vld [vmem:[#allocation61_spill] sm:$0xff] }
 0x3b7   : > { %v1183_v55 = vadd.f32 %v1182_v43, %v2422_v2  ;;  %v1291_v12 = vmul.f32 %v3490_v13, %v2614_v5 }
 0x3b8   : > { %v1110_v3 = vrot.slane %v1109_v32, 1  ;;  %1953 = vtanh.f32 %v565_v39 }
 0x3b9   : > { %1955 = vtanh.f32 %v1183_v55  ;;  %v3491_v55 = vld [vmem:[#allocation60_spill] sm:$0xff] }
 0x3ba   : > { %v1111_v63 = vadd.f32 %v1110_v3, %v1109_v32  ;;  %1957 = vtanh.f32 %v566_v23  ;;  %v3489_v32 = vld [vmem:[#allocation59_spill] sm:$0xff]  ;;  %v1282_v23 = vmul.f32 %v3491_v55, %v2476_v61 }
 0x3bb   : > { %v1281_v43 = vmul.f32 %v3489_v32, %v2476_v61  ;;  %v3494_v32 = vmov 16  }
 0x3bc   : > { %v1112_v27 = vadd.f32 %v1111_v63, %v2425_v7  ;;  %v3492_v63 = vld [vmem:[#allocation62_spill] sm:$0xff] }
 0x3be   : > { %v2983_v16 = vpop.eup %1953  ;;  %1959 = vtanh.f32 %v1112_v27  ;;  %v1292_v27 = vmul.f32 %v3492_v63, %v2614_v5 }
 0x3bf   : > { %v1956_v50 = vpop.eup %1955  ;;  %v597_v58 = vmul.f32 %v2983_v16, %v2759_v54  ;;  %v705_v25 = vmul.f32 %v2983_v16, %v2985_v33 }
 0x3c0   : > { %v2987_v4 = vpop.eup %1957  ;;  %v1216_v14 = vmul.f32 1.442695, %v1956_v50  ;;  %v1300_v61 = vadd.f32 %v1292_v27, %v1282_v23 }
 0x3c1   : > { %v598_v2 = vmul.f32 %v2987_v4, %v2759_v54  ;;  %v706_v7 = vmul.f32 %v2987_v4, %v2985_v33  ;;  %v601_v35 = vadd.f32 %v2765_v62, %v597_v58  ;;  %v709_v1 = vadd.f32 %v3486_v30, %v705_v25 }
 0x3c2   : > { %1961 = vpow2.f32 %v1216_v14  ;;  %v793_v58 = vmul.f32 %v2983_v16, %v2983_v16  ;;  %v743_v14 = vpop.permute.xlu2 %742 }
 0x3c3   : > { %v610_v41 = vadd.f32 %v3485_v59, %v598_v2  ;;  %v718_v46 = vadd.f32 %v3487_v45, %v706_v7  ;;  %v602_v47 = vrot.slane %v601_v35, 4  ;;  %v710_v48 = vrot.slane %v709_v1, 4 }
 0x3c4   : > { %v1960_v40 = vpop.eup %1959  ;;  %v794_v2 = vmul.f32 %v2987_v4, %v2987_v4  ;;  %v801_v45 = vsub.f32 1.0, %v793_v58 }
 0x3c5   : > { %v611_v37 = vrot.slane %v610_v41, 4  ;;  %v719_v24 = vrot.slane %v718_v46, 4  ;;  %v1145_v20 = vmul.f32 1.442695, %v1960_v40  ;;  %v603_v10 = vadd.f32 %v602_v47, %v601_v35 }
 0x3c6   : > { %v711_v57 = vadd.f32 %v710_v48, %v709_v1  ;;  %v1299_v35 = vadd.f32 %v1291_v12, %v1281_v43  ;;  %v635_v1 = vpop.permute.xlu1 %634  ;;  %v802_v5 = vsub.f32 1.0, %v794_v2  ;;  %v752_v40 = vmul.f32 %v2987_v4, %v743_v14 }
 0x3c7   : > { %v612_v31 = vadd.f32 %v611_v37, %v610_v41  ;;  %v720_v18 = vadd.f32 %v719_v24, %v718_v46  ;;  %1963 = vpow2.f32 %v1145_v20  ;;  %v604_v28 = vrot.slane %v603_v10, 2 }
 0x3c8   : > { %v1962_v52 = vpop.eup %1961  ;;  %v712_v39 = vrot.slane %v711_v57, 2  ;;  %1965 = vpow2.f32 %v1226_v29  ;;  %v751_v46 = vmul.f32 %v2983_v16, %v743_v14  ;;  %v3016_v48 = vmul.f32 %v1299_v35, %v801_v45  ;;  %v3493_v29 = vld [vmem:[#allocation53_spill] sm:$0xff] }
 0x3c9   : > { %v1218_v62 = vmul.f32 0.0, %v1962_v52  ;;  %v613_v60 = vrot.slane %v612_v31, 2  ;;  %v721_v3 = vrot.slane %v720_v18, 2  ;;  %v605_v25 = vadd.f32 %v604_v28, %v603_v10 }
 0x3ca   : > { %v713_v41 = vadd.f32 %v712_v39, %v711_v57  ;;  %v764_v57 = vadd.f32 %v2915_v34, %v752_v40  ;;  %v641_v28 = vmul.f32 %v2736_v36, %v3493_v29  ;;  %v1409_v43 = vmul.f32 %v3016_v48, %v743_v14 }
 0x3cb   : > { %v614_v59 = vadd.f32 %v613_v60, %v612_v31  ;;  %v722_v30 = vadd.f32 %v721_v3, %v720_v18  ;;  %v606_v37 = vrot.slane %v605_v25, 1  ;;  %v755_v31 = vadd.f32 %v2913_v26, %v751_v46 }
 0x3cc   : > { %v714_v10 = vrot.slane %v713_v41, 1  ;;  %v1308_v18 = vmul.f32 %v1300_v61, %v802_v5  ;;  %v642_v60 = vmul.f32 %v2738_v11, %v3493_v29  ;;  %v765_v39 = vrot.slane %v764_v57, 4 }
 0x3cd   : > { %v1964_v7 = vpop.eup %1963  ;;  %v615_v20 = vrot.slane %v614_v59, 1  ;;  %v723_v52 = vrot.slane %v722_v30, 1  ;;  %v607_v13 = vadd.f32 %v606_v37, %v605_v25  ;;  %v756_v26 = vrot.slane %v755_v31, 4 }
 0x3ce   : > { %v1147_v47 = vmul.f32 0.0, %v1964_v7  ;;  %v1410_v34 = vmul.f32 %v1308_v18, %v743_v14  ;;  %v1413_v55 = vadd.f32 %v2938_v53, %v1409_v43  ;;  %v645_v36 = vmul.f32 %v2747_v8, %v635_v1  ;;  %v639_v58 = vpop.permute.xlu1 %638 }
 0x3cf   : > { %v616_v12 = vadd.f32 %v615_v20, %v614_v59  ;;  %v724_v3 = vadd.f32 %v723_v52, %v722_v30  ;;  %v1315_v11 = vmul.f32 %v3016_v48, %v2759_v54  ;;  %v1316_v23 = vmul.f32 %v1308_v18, %v2759_v54 }
 0x3d0   : > { %v646_v63 = vmul.f32 %v2757_v22, %v635_v1  ;;  %v1339_v27 = vmul.f32 %v2919_v9, %v635_v1  ;;  %v1335_v2 = vmul.f32 %v2903_v6, %v3493_v29  ;;  %v3037_v25 = vadd.f32 %v2940_v17, %v1410_v34  ;;  %v3495_v22 = vld [vmem:[#allocation48_spill] sm:$0xff]  ;;  %v3496_v9 = vld [vmem:[#allocation49_spill] sm:$0xff] }
 0x3d1   : > { %v1336_v8 = vmul.f32 %v2905_v38, %v3493_v29  ;;  %v1319_v7 = vadd.f32 %v2955_v51, %v1315_v11  ;;  %v1328_v54 = vadd.f32 %v2957_v21, %v1316_v23  ;;  %v1414_v6 = vrot.slane %v1413_v55, 4 }
 0x3d2   : > { %v647_v17 = vmul.f32 %v2983_v16, %v639_v58  ;;  %v766_v30 = vadd.f32 %v765_v39, %v764_v57  ;;  %v648_v51 = vmul.f32 %v2987_v4, %v639_v58  ;;  %v1341_v21 = vmul.f32 %v3016_v48, %v639_v58 }
 0x3d3   : > { %v1320_v5 = vrot.slane %v1319_v7, 4  ;;  %v1329_v46 = vrot.slane %v1328_v54, 4  ;;  %v1415_v4 = vadd.f32 %v1414_v6, %v1413_v55  ;;  %v1384_v29 = vmul.f32 %v1308_v18, %v2985_v33 }
 0x3d4   : > { %v767_v20 = vrot.slane %v766_v30, 2 }
 0x3d5   : > { %v1321_v57 = vadd.f32 %v1320_v5, %v1319_v7 }
 0x3df   : > { %v1221_v0 = vpop.permute.xlu0 %1220 }
 0x3e0   : > { %v1223_v50 = vadd.f32 %v1221_v0, %v1218_v62  ;;  %v1966_v62 = vpop.eup %1965  ;;  %v715_v0 = vadd.f32 %v714_v10, %v713_v41  ;;  %v757_v41 = vadd.f32 %v756_v26, %v755_v31  ;;  %v1383_v31 = vmul.f32 %v3016_v48, %v2985_v33 }
 0x3e1   : > { %v1396_v48 = vadd.f32 %v2969_v49, %v1384_v29 }
 0x3e2   : > { %1245 = vperm.xlu1 %1879, %v1223_v50   ;;  %v1340_v50 = vmul.f32 %v2923_v44, %v635_v1  ;;  %v758_v16 = vrot.slane %v757_v41, 2  ;;  %v1387_v26 = vadd.f32 %v2967_v56, %v1383_v31 }
 0x3e7   : > { %v1150_v24 = vpop.permute.xlu0 %1149 }
 0x3e8   : > { %v1152_v42 = vadd.f32 %v1150_v24, %v1147_v47  ;;  %v1342_v24 = vmul.f32 %v1308_v18, %v639_v58  ;;  %v1322_v18 = vrot.slane %v1321_v57, 2 }
 0x3ea   : > { %1231 = vperm.xlu2 %1880, %v1152_v42   ;;  %1882 = vset.pattern.permute.xlu1 %v3494_v32  ;;  %v1330_v42 = vadd.f32 %v1329_v46, %v1328_v54 }
 0x3eb   : > { %1664 = vperm.xlu1 %1882, %v1966_v62  }
 0x3ef   : > { %v631_v53 = vpop.permute.xlu0 %630 }
 0x3f0   : > { %v643_v14 = vmul.f32 %v3495_v22, %v631_v53  ;;  %v644_v35 = vmul.f32 %v3496_v9, %v631_v53  ;;  %v1337_v44 = vmul.f32 %v2907_v19, %v631_v53  ;;  %v1338_v59 = vmul.f32 %v2909_v15, %v631_v53 }
 0x3f1   : > { %v1423_v15 = vrot.slane %v3037_v25, 4 }
 0x3f2   : > { %v649_v61 = vadd.f32 %v643_v14, %v641_v28  ;;  %v658_v1 = vadd.f32 %v644_v35, %v642_v60  ;;  %v1343_v38 = vadd.f32 %v1337_v44, %v1335_v2  ;;  %v1352_v45 = vadd.f32 %v1338_v59, %v1336_v8 }
 0x3f3   : > { %v1397_v2 = vrot.slane %v1396_v48, 4  ;;  %v1424_v8 = vadd.f32 %v1423_v15, %v3037_v25  ;;  %v1416_v14 = vrot.slane %v1415_v4, 2  ;;  %v1323_v35 = vadd.f32 %v1322_v18, %v1321_v57 }
 0x3f4   : > { %v650_v40 = vadd.f32 %v649_v61, %v645_v36  ;;  %v659_v47 = vadd.f32 %v658_v1, %v646_v63  ;;  %v1344_v19 = vadd.f32 %v1343_v38, %v1339_v27  ;;  %v1353_v37 = vadd.f32 %v1352_v45, %v1340_v50 }
 0x3f5   : > { %v759_v63 = vadd.f32 %v758_v16, %v757_v41  ;;  %v768_v27 = vadd.f32 %v767_v20, %v766_v30  ;;  %v1398_v61 = vadd.f32 %v1397_v2, %v1396_v48 }
 0x3f6   : > { %v651_v10 = vadd.f32 %v650_v40, %v647_v17  ;;  %v660_v52 = vadd.f32 %v659_v47, %v648_v51  ;;  %v1345_v62 = vadd.f32 %v1344_v19, %v1341_v21  ;;  %v1354_v28 = vadd.f32 %v1353_v37, %v1342_v24 }
 0x3f7   : > { %v760_v7 = vrot.slane %v759_v63, 1  ;;  %v769_v30 = vrot.slane %v768_v27, 1  ;;  %v1425_v51 = vrot.slane %v1424_v8, 2  ;;  %v1417_v40 = vadd.f32 %v1416_v14, %v1415_v4 }
 0x3f8   : > { %v3054_v60 = vpop.permute.xlu0 %618  ;;  %v652_v32 = vrot.slane %v651_v10, 4  ;;  %v661_v43 = vrot.slane %v660_v52, 4  ;;  %v1346_v55 = vrot.slane %v1345_v62, 4  ;;  %v1355_v50 = vrot.slane %v1354_v28, 4 }
 0x3f9   : > { %v621_v39 = vadd.f32 %v3054_v60, %v607_v13  ;;  %v622_v34 = vadd.f32 %v3054_v60, %v616_v12  ;;  %v725_v36 = vadd.f32 %v715_v0, %v3054_v60  ;;  %v726_v33 = vadd.f32 %v724_v3, %v3054_v60 }
 0x3fa   : > { %v653_v11 = vadd.f32 %v652_v32, %v651_v10  ;;  %v662_v23 = vadd.f32 %v661_v43, %v660_v52  ;;  %v1331_v13 = vrot.slane %v1330_v42, 2  ;;  %v1388_v12 = vrot.slane %v1387_v26, 4 }
 0x3fb   : > { %1967 = vtanh.f32 %v621_v39  ;;  %v1347_v49 = vadd.f32 %v1346_v55, %v1345_v62  ;;  %v1356_v22 = vadd.f32 %v1355_v50, %v1354_v28  ;;  %v761_v45 = vadd.f32 %v760_v7, %v759_v63  ;;  %v3498_v63 = vld [vmem:[#allocation46_spill] sm:$0xff] }
 0x3fc   : > { %1969 = vtanh.f32 %v622_v34  ;;  %v654_v56 = vrot.slane %v653_v11, 2  ;;  %v663_v58 = vrot.slane %v662_v23, 2  ;;  %v1332_v44 = vadd.f32 %v1331_v13, %v1330_v42 }
 0x3fd   : > { %1971 = vtanh.f32 %v725_v36  ;;  %v1389_v59 = vadd.f32 %v1388_v12, %v1387_v26  ;;  %v1348_v41 = vrot.slane %v1347_v49, 2  ;;  %v1357_v46 = vrot.slane %v1356_v22, 2 }
 0x3fe   : > { %v655_v0 = vadd.f32 %v654_v56, %v653_v11  ;;  %v664_v53 = vadd.f32 %v663_v58, %v662_v23  ;;  %1973 = vtanh.f32 %v726_v33  ;;  %v1324_v47 = vrot.slane %v1323_v35, 1  ;;  %v3497_v11 = vld [vmem:[#allocation44_spill] sm:$0xff] }
 0x3ff   : > { %v1333_v19 = vrot.slane %v1332_v44, 1  ;;  %v1390_v37 = vrot.slane %v1389_v59, 2  ;;  %v1349_v24 = vadd.f32 %v1348_v41, %v1347_v49  ;;  %v1399_v20 = vrot.slane %v1398_v61, 2 }
 0x400   : > { %v656_v3 = vrot.slane %v655_v0, 1  ;;  %v665_v54 = vrot.slane %v664_v53, 1  ;;  %v770_v52 = vadd.f32 %v769_v30, %v768_v27  ;;  %v1426_v31 = vadd.f32 %v1425_v51, %v1424_v8 }
 0x401   : > { %v3063_v9 = vpop.eup %1967  ;;  %v1358_v42 = vadd.f32 %v1357_v46, %v1356_v22  ;;  %v1325_v29 = vadd.f32 %v1324_v47, %v1323_v35  ;;  %v1334_v28 = vadd.f32 %v1333_v19, %v1332_v44  ;;  %v1391_v32 = vadd.f32 %v1390_v37, %v1389_v59 }
 0x402   : > { %v3065_v6 = vpop.eup %1969  ;;  %v669_v17 = vmul.f32 1.442695, %v3063_v9  ;;  %v657_v25 = vadd.f32 %v656_v3, %v655_v0  ;;  %v666_v5 = vadd.f32 %v665_v54, %v664_v53  ;;  %v803_v15 = vmul.f32 %v3063_v9, %v3063_v9 }
 0x403   : > { %v3068_v1 = vpop.eup %1971  ;;  %v671_v38 = vmul.f32 1.442695, %v3065_v6  ;;  %v804_v4 = vmul.f32 %v3065_v6, %v3065_v6  ;;  %v1418_v43 = vrot.slane %v1417_v40, 1  ;;  %v1350_v34 = vrot.slane %v1349_v24, 1 }
 0x404   : > { %v3071_v21 = vpop.eup %1973  ;;  %1975 = vpow2.f32 %v669_v17  ;;  %v773_v16 = vmul.f32 1.442695, %v3068_v1  ;;  %v667_v10 = vadd.f32 %v657_v25, %v3054_v60  ;;  %v668_v57 = vadd.f32 %v666_v5, %v3054_v60 }
 0x405   : > { %1977 = vpow2.f32 %v671_v38  ;;  %v775_v62 = vmul.f32 1.442695, %v3071_v21  ;;  %v805_v39 = vsub.f32 1.0, %v803_v15  ;;  %v771_v36 = vadd.f32 %v761_v45, %v3054_v60 }
 0x406   : > { %1979 = vpow2.f32 %v773_v16  ;;  %v1400_v48 = vadd.f32 %v1399_v20, %v1398_v61  ;;  %v677_v33 = vrot.slane %v667_v10, 2  ;;  %v807_v18 = vmul.f32 %v3068_v1, %v3068_v1 }
 0x407   : > { %1981 = vpow2.f32 %v775_v62  ;;  %v678_v50 = vrot.slane %v668_v57, 2  ;;  %v806_v56 = vsub.f32 1.0, %v804_v4  ;;  %v1359_v58 = vrot.slane %v1358_v42, 1 }
 0x408   : > { %v772_v2 = vadd.f32 %v770_v52, %v3054_v60  ;;  %v1392_v0 = vrot.slane %v1391_v32, 1  ;;  %v781_v7 = vrot.slane %v771_v36, 2  ;;  %v808_v3 = vmul.f32 %v3071_v21, %v3071_v21 }
 0x409   : > { %v1351_v54 = vadd.f32 %v1350_v34, %v1349_v24  ;;  %v809_v35 = vsub.f32 1.0, %v807_v18  ;;  %v1360_v44 = vadd.f32 %v1359_v58, %v1358_v42  ;;  %v1401_v17 = vrot.slane %v1400_v48, 1  ;;  %v3502_v18 = vld [vmem:[#allocation20_spill] sm:$0xff] }
 0x40a   : > { %v1976_v26 = vpop.eup %1975  ;;  %v1427_v41 = vrot.slane %v1426_v31, 1  ;;  %v1393_v25 = vadd.f32 %v1392_v0, %v1391_v32  ;;  %v782_v5 = vrot.slane %v772_v2, 2  ;;  %v810_v46 = vsub.f32 1.0, %v808_v3  ;;  %v3499_v32 = vld [vmem:[#allocation54_spill] sm:$0xff]  ;;  %v1644_v3 = vpop.permute.xlu0 %1643 }
 0x40b   : > { %v1978_v55 = vpop.eup %1977  ;;  %v673_v23 = vmul.f32 %v3497_v11, %v1976_v26  ;;  %v1419_v47 = vadd.f32 %v1418_v43, %v1417_v40  ;;  %v1402_v15 = vadd.f32 %v1401_v17, %v1400_v48  ;;  %v1369_v62 = vsub.f32 0.0, %v3063_v9  ;;  %v3505_v2 = vld [vmem:[#allocation22_spill] sm:$0xff] }
 0x40c   : > { %v674_v27 = vmul.f32 %v3498_v63, %v1978_v55  ;;  %v1980_v53 = vpop.eup %1979  ;;  %v1428_v20 = vadd.f32 %v1427_v41, %v1426_v31  ;;  %v1370_v57 = vsub.f32 0.0, %v3065_v6  ;;  %v3500_v6 = vld [vmem:[#allocation29_spill] sm:$0xff]  ;;  %v3123_v0 = vmul.f32 %v3505_v2, %v3505_v2  ;;  %v3509_v41 = vld [vmem:[#allocation19_spill] sm:$0xff] }
 0x40d   : > { %v681_v13 = vadd.f32 %v677_v33, %v673_v23  ;;  %v1361_v12 = vmul.f32 %v805_v39, %v673_v23  ;;  %v777_v14 = vmul.f32 %v3497_v11, %v1980_v53  ;;  %v1982_v30 = vpop.eup %1981  ;;  %v1371_v4 = vmul.f32 1.442695, %v1369_v62  ;;  %v3501_v11 = vld [vmem:[#allocation16_spill] sm:$0xff] }
 0x40e   : > { %v682_v49 = vadd.f32 %v678_v50, %v674_v27  ;;  %v1362_v8 = vmul.f32 %v806_v56, %v674_v27  ;;  %v778_v51 = vmul.f32 %v3498_v63, %v1982_v30  ;;  %v1373_v42 = vmul.f32 1.442695, %v1370_v57  ;;  %v3503_v50 = vld [vmem:[#allocation21_spill] sm:$0xff] }
 0x40f   : > { %v1363_v22 = vmul.f32 %v1361_v12, %v1325_v29  ;;  %v3090_v60 = vadd.f32 %v781_v7, %v777_v14  ;;  %v1429_v38 = vmul.f32 %v809_v35, %v777_v14  ;;  %1983 = vpow2.f32 %v1371_v4  ;;  %v3507_v7 = vld [vmem:[#allocation42_spill] sm:$0xff] }
 0x410   : > { %v1364_v59 = vmul.f32 %v1362_v8, %v1334_v28  ;;  %v786_v37 = vadd.f32 %v782_v5, %v778_v51  ;;  %v1430_v24 = vmul.f32 %v810_v46, %v778_v51  ;;  %1985 = vpow2.f32 %v1373_v42  ;;  %v3508_v14 = vld [vmem:[#allocation18_spill] sm:$0xff]  ;;  %v2005_v51 = vld [vmem:[%s2238_s7] sm:$0xff] }
 0x411   : > { %v1365_v61 = vadd.f32 %v1363_v22, %v1351_v54  ;;  %v1431_v19 = vmul.f32 %v1429_v38, %v1393_v25  ;;  %v1547_v55 = vsub.f32 0.0, %v3500_v6  ;;  %v3108_v23 = vmul.f32 %v3501_v11, %v3501_v11 }
 0x412   : > { %v1366_v45 = vadd.f32 %v1364_v59, %v1360_v44  ;;  %v1432_v10 = vmul.f32 %v1430_v24, %v1402_v15  ;;  %v1437_v33 = vsub.f32 0.0, %v3068_v1  ;;  %v3113_v63 = vmul.f32 %v3502_v18, %v3502_v18  ;;  %v3511_v24 = vld [vmem:[#allocation24_spill] sm:$0xff] }
 0x413   : > { %v3093_v16 = vadd.f32 %v1431_v19, %v1419_v47  ;;  %v1438_v27 = vsub.f32 0.0, %v3071_v21  ;;  %v3118_v56 = vmul.f32 %v3503_v50, %v3503_v50  ;;  %v1549_v58 = vmul.f32 1.442695, %v1547_v55  ;;  %v3512_v50 = vld [vmem:[#allocation45_spill] sm:$0xff] }
 0x414   : > { %v3095_v52 = vadd.f32 %v1432_v10, %v1428_v20  ;;  %v467_v53 = vsub.f32 1.0, %v3108_v23  ;;  %v1439_v1 = vmul.f32 1.442695, %v1437_v33  ;;  %v480_v21 = vmul.f32 %v3507_v7, %v3507_v7 }
 0x415   : > { %v1984_v39 = vpop.eup %1983  ;;  %v468_v54 = vsub.f32 1.0, %v3113_v63  ;;  %v1441_v22 = vmul.f32 1.442695, %v1438_v27  ;;  %v3133_v35 = vmul.f32 %v3508_v14, %v3508_v14  ;;  %v471_v44 = vsub.f32 1.0, %v3118_v56  ;;  %v3523_v63 = vld [vmem:[#allocation11_spill] sm:$0xff] }
 0x416   : > { %v1986_v36 = vpop.eup %1985  ;;  %1987 = vpow2.f32 %v1549_v58  ;;  %v3139_v30 = vmul.f32 %v3509_v41, %v3509_v41  ;;  %v1646_v5 = vmul.f32 %v2005_v51, %v1644_v3  ;;  %v472_v46 = vsub.f32 1.0, %v3123_v0 }
 0x417   : > { %1989 = vpow2.f32 %v1439_v1  ;;  %v482_v15 = vsub.f32 1.0, %v480_v21  ;;  %v3150_v20 = vmul.f32 %v3511_v24, %v3511_v24  ;;  %v469_v10 = vsub.f32 1.0, %v3133_v35 }
 0x418   : > { %1991 = vpow2.f32 %v1441_v22  ;;  %v470_v42 = vsub.f32 1.0, %v3139_v30 }
 0x419   : > { %v474_v11 = vsub.f32 1.0, %v3150_v20 }
 0x444   : > { %v1232_v29 = vpop.permute.xlu2 %1231 }
 0x445   : > { %v1234_v40 = vsub.f32 %v681_v13, %v1232_v29  ;;  %v1235_v28 = vsub.f32 %v682_v49, %v1232_v29  ;;  %v3504_v13 = vld [vmem:[#allocation30_spill] sm:$0xff]  ;;  %v3506_v49 = vld [vmem:[#allocation41_spill] sm:$0xff] }
 0x446   : > { %v1548_v12 = vsub.f32 0.0, %v3504_v13  ;;  %v479_v8 = vmul.f32 %v3506_v49, %v3506_v49  ;;  %v1627_v59 = vsub.f32 0.0, %v3506_v49  ;;  %v3513_v13 = vld [vmem:[#allocation47_spill] sm:$0xff] }
 0x447   : > { %v1241_v43 = vmul.f32 %v3499_v32, %v1234_v40  ;;  %v1242_v26 = vmul.f32 %v3499_v32, %v1235_v28  ;;  %v3156_v28 = vpop.eup %1987 }
 0x448   : > { %v1551_v38 = vmul.f32 1.442695, %v1548_v12  ;;  %v481_v19 = vsub.f32 1.0, %v479_v8  ;;  %v1629_v4 = vmul.f32 1.442695, %v1627_v59  ;;  %v1990_v55 = vpop.eup %1989  ;;  %v1555_v12 = vrot.slane %v3156_v28, 6 }
 0x449   : > { %v1367_v31 = vsub.f32 %v1241_v43, %v1365_v61  ;;  %v1368_v34 = vsub.f32 %v1242_v26, %v1366_v45  ;;  %v3510_v61 = vld [vmem:[#allocation23_spill] sm:$0xff]  ;;  %v1628_v45 = vsub.f32 0.0, %v3507_v7  ;;  %v2006_v43 = vld [vmem:[%s2238_s7 + $0x8] sm:$0xff]  ;;  %v1992_v27 = vpop.eup %1991 }
 0x44a   : > { %v3143_v25 = vmul.f32 %v3510_v61, %v3510_v61  ;;  %1993 = vpow2.f32 %v1551_v38  ;;  %v1647_v26 = vmul.f32 %v2006_v43, %v1644_v3  ;;  %v3514_v8 = vld [vmem:[#allocation7_spill] sm:$0xff]  ;;  %v3515_v3 = vld [vmem:[#allocation10_spill] sm:$0xff]  ;;  %v3517_v38 = vld [vmem:[#allocation9_spill] sm:$0xff] }
 0x44b   : > { %v3101_v48 = vmul.f32 %v1984_v39, %v1367_v31  ;;  %v3103_v9 = vmul.f32 %v1986_v36, %v1368_v34  ;;  %v1631_v40 = vmul.f32 1.442695, %v1628_v45  ;;  %v3159_v39 = vrot.slane %v1646_v5, 4  ;;  %v3516_v59 = vld [vmem:[#allocation6_spill] sm:$0xff]  ;;  %v3520_v43 = vld [vmem:[#allocation8_spill] sm:$0xff] }
 0x44c   : > { %v473_v29 = vsub.f32 1.0, %v3143_v25  ;;  %v1615_v36 = vrot.slane %v481_v19, 6  ;;  %1995 = vpow2.f32 %v1629_v4  ;;  %v3175_v2 = vrot.slane %v1647_v26, 4  ;;  %v3543_v28 = vld [vmem:[#allocation58_spill] sm:$0xff] }
 0x44d   : > { %v1446_v6 = vperm.slane %v3103_v9, 0  ;;  %1997 = vpow2.f32 %v1631_v40  ;;  %v1654_v1 = vsub.f32 %v3101_v48, %v3159_v39 }
 0x44e   : > { %v3169_v58 = vmul.f32 %v1615_v36, %v3512_v50 }
 0x44f   : > { %v1448_v21 = vmul.f32 %v1446_v6, %v3514_v8  ;;  %v1450_v14 = vmul.f32 %v1446_v6, %v3515_v3  ;;  %v1452_v41 = vmul.f32 %v1446_v6, %v3516_v59  ;;  %v1454_v51 = vmul.f32 %v1446_v6, %v3517_v38 }
 0x454   : > { %v1246_v17 = vpop.permute.xlu1 %1245 }
 0x455   : > { %v1247_v47 = vrot.slane %v1246_v17, 7 }
 0x457   : > { %v1249_v62 = vsub.f32 %v3090_v60, %v1247_v47  ;;  %v1250_v57 = vsub.f32 %v786_v37, %v1247_v47  ;;  %v1616_v60 = vrot.slane %v482_v15, 6  ;;  %v1445_v37 = vperm.slane %v3101_v48, 0  ;;  %v3518_v15 = vld [vmem:[#allocation5_spill] sm:$0xff]  ;;  %v3541_v48 = vld [vmem:[#allocation56_spill] sm:$0xff] }
 0x459   : > { %v1251_v31 = vmul.f32 %v1249_v62, %v3499_v32  ;;  %v1252_v34 = vmul.f32 %v1250_v57, %v3499_v32  ;;  %v3172_v32 = vmul.f32 %v1616_v60, %v3513_v13  ;;  %v1447_v7 = vmul.f32 %v1445_v37, %v3514_v8  ;;  %v3519_v62 = vld [vmem:[#allocation13_spill] sm:$0xff] }
 0x45a   : > { %v1449_v22 = vmul.f32 %v1445_v37, %v3515_v3  ;;  %v1451_v17 = vmul.f32 %v1445_v37, %v3516_v59  ;;  %v1453_v45 = vmul.f32 %v1445_v37, %v3517_v38  ;;  %v3527_v38 = vld [vmem:[#allocation17_spill] sm:$0xff] }
 0x45b   : > { %v1435_v33 = vsub.f32 %v1251_v31, %v3093_v16  ;;  %v1436_v18 = vsub.f32 %v1252_v34, %v3095_v52  ;;  %v3183_v52 = vpop.eup %1993  ;;  %v3521_v34 = vld [vmem:[#allocation14_spill] sm:$0xff] }
 0x45c   : > { %v3199_v19 = vpop.eup %1995 }
 0x45d   : > { %v3179_v49 = vmul.f32 %v1990_v55, %v1435_v33  ;;  %v3181_v16 = vmul.f32 %v1992_v27, %v1436_v18  ;;  %v3205_v40 = vpop.eup %1997 }
 0x45f   : > { %v1455_v30 = vperm.slane %v3179_v49, 1  ;;  %v1456_v61 = vperm.slane %v3181_v16, 1  ;;  %v1656_v5 = vsub.f32 %v3179_v49, %v3159_v39  ;;  %v1657_v47 = vsub.f32 %v3181_v16, %v3175_v2  ;;  %v3540_v49 = vld [vmem:[#allocation55_spill] sm:$0xff] }
 0x461   : > { %v1457_v24 = vmul.f32 %v1455_v30, %v3518_v15  ;;  %v1458_v20 = vmul.f32 %v1456_v61, %v3518_v15  ;;  %v1459_v57 = vmul.f32 %v1455_v30, %v3519_v62  ;;  %v1460_v4 = vmul.f32 %v1456_v61, %v3519_v62  ;;  %v3528_v15 = vld [vmem:[#allocation28_spill] sm:$0xff]  ;;  %v3529_v62 = vld [vmem:[#allocation33_spill] sm:$0xff] }
 0x462   : > { %v1461_v26 = vmul.f32 %v1455_v30, %v3520_v43  ;;  %v1462_v31 = vmul.f32 %v1456_v61, %v3520_v43  ;;  %v1463_v36 = vmul.f32 %v1455_v30, %v3521_v34  ;;  %v1464_v60 = vmul.f32 %v1456_v61, %v3521_v34  ;;  %v3530_v43 = vld [vmem:[#allocation36_spill] sm:$0xff]  ;;  %v3531_v34 = vld [vmem:[#allocation34_spill] sm:$0xff] }
 0x463   : > { %v1465_v37 = vadd.f32 %v1457_v24, %v1447_v7  ;;  %v1466_v6 = vadd.f32 %v1458_v20, %v1448_v21  ;;  %v1467_v55 = vadd.f32 %v1459_v57, %v1449_v22  ;;  %v1468_v33 = vadd.f32 %v1460_v4, %v1450_v14 }
 0x464   : > { %v1469_v18 = vadd.f32 %v1461_v26, %v1451_v17  ;;  %v1470_v27 = vadd.f32 %v1462_v31, %v1452_v41  ;;  %v1471_v50 = vadd.f32 %v1463_v36, %v1453_v45  ;;  %v1472_v13 = vadd.f32 %v1464_v60, %v1454_v51  ;;  %v3522_v17 = vld [vmem:[#allocation15_spill] sm:$0xff] }
 0x465   : > { %v1473_v8 = vmul.f32 %v1465_v37, %v467_v53  ;;  %v1474_v3 = vmul.f32 %v1466_v6, %v468_v54  ;;  %v1475_v59 = vmul.f32 %v1467_v55, %v469_v10  ;;  %v1476_v30 = vmul.f32 %v1468_v33, %v470_v42  ;;  %v3524_v10 = vld [vmem:[#allocation25_spill] sm:$0xff]  ;;  %v3532_v37 = vld [vmem:[#allocation39_spill] sm:$0xff] }
 0x466   : > { %v1477_v7 = vmul.f32 %v1469_v18, %v471_v44  ;;  %v1478_v21 = vmul.f32 %v1470_v27, %v472_v46  ;;  %v1479_v22 = vmul.f32 %v1471_v50, %v473_v29  ;;  %v1480_v14 = vmul.f32 %v1472_v13, %v474_v11  ;;  %v3525_v44 = vld [vmem:[#allocation12_spill] sm:$0xff]  ;;  %v3526_v29 = vld [vmem:[#allocation27_spill] sm:$0xff]  ;;  %v3533_v33 = vld [vmem:[#allocation37_spill] sm:$0xff] }
 0x467   : > { %v1481_v23 = vmul.f32 %v1473_v8, %v3522_v17  ;;  %v1482_v53 = vmul.f32 %v1474_v3, %v3522_v17  ;;  %v1483_v54 = vmul.f32 %v1475_v59, %v3523_v63  ;;  %v1484_v35 = vmul.f32 %v1476_v30, %v3523_v63  ;;  %v3534_v17 = vld [vmem:[#allocation26_spill] sm:$0xff] }
 0x468   : > { %v1485_v42 = vmul.f32 %v1477_v7, %v3524_v10  ;;  %v1486_v56 = vmul.f32 %v1478_v21, %v3524_v10  ;;  %v1487_v41 = vmul.f32 %v1479_v22, %v3525_v44  ;;  %v1488_v0 = vmul.f32 %v1480_v14, %v3525_v44  ;;  %v3535_v44 = vld [vmem:[#allocation35_spill] sm:$0xff] }
 0x469   : > { %v1489_v46 = vadd.f32 %v1483_v54, %v1481_v23  ;;  %v1498_v25 = vadd.f32 %v1484_v35, %v1482_v53  ;;  %v1507_v11 = vmul.f32 %v1473_v8, %v3526_v29  ;;  %v1508_v61 = vmul.f32 %v1474_v3, %v3526_v29 }
 0x46a   : > { %v1509_v45 = vmul.f32 %v1475_v59, %v3527_v38  ;;  %v1510_v51 = vmul.f32 %v1476_v30, %v3527_v38  ;;  %v1511_v24 = vmul.f32 %v1477_v7, %v3528_v15  ;;  %v1512_v20 = vmul.f32 %v1478_v21, %v3528_v15 }
 0x46b   : > { %v1561_v57 = vmul.f32 %v1473_v8, %v3529_v62  ;;  %v1562_v4 = vmul.f32 %v1474_v3, %v3529_v62  ;;  %v1563_v26 = vmul.f32 %v1475_v59, %v3530_v43  ;;  %v1564_v31 = vmul.f32 %v1476_v30, %v3530_v43 }
 0x46c   : > { %v1565_v36 = vmul.f32 %v1477_v7, %v3531_v34  ;;  %v1566_v60 = vmul.f32 %v1478_v21, %v3531_v34  ;;  %v1587_v6 = vmul.f32 %v1473_v8, %v3532_v37  ;;  %v1588_v55 = vmul.f32 %v1474_v3, %v3532_v37 }
 0x46d   : > { %v1589_v18 = vmul.f32 %v1475_v59, %v3533_v33  ;;  %v1590_v27 = vmul.f32 %v1476_v30, %v3533_v33  ;;  %v1490_v50 = vadd.f32 %v1489_v46, %v1485_v42  ;;  %v1499_v13 = vadd.f32 %v1498_v25, %v1486_v56  ;;  %v3536_v42 = vld [vmem:[#allocation38_spill] sm:$0xff] }
 0x46e   : > { %v1513_v23 = vmul.f32 %v1479_v22, %v3534_v17  ;;  %v1514_v53 = vmul.f32 %v1480_v14, %v3534_v17  ;;  %v1515_v63 = vadd.f32 %v1509_v45, %v1507_v11  ;;  %v1524_v54 = vadd.f32 %v1510_v51, %v1508_v61  ;;  %v3537_v45 = vld [vmem:[#allocation40_spill] sm:$0xff] }
 0x46f   : > { %v1491_v35 = vadd.f32 %v1490_v50, %v1487_v41  ;;  %v1500_v10 = vadd.f32 %v1499_v13, %v1488_v0  ;;  %v1567_v29 = vmul.f32 %v1479_v22, %v3535_v44  ;;  %v1568_v8 = vmul.f32 %v1480_v14, %v3535_v44 }
 0x470   : > { %v1516_v38 = vadd.f32 %v1515_v63, %v1511_v24  ;;  %v1525_v3 = vadd.f32 %v1524_v54, %v1512_v20  ;;  %v1569_v15 = vadd.f32 %v1563_v26, %v1561_v57  ;;  %v1578_v59 = vadd.f32 %v1564_v31, %v1562_v4 }
 0x471   : > { %v1492_v62 = vrot.slane %v1491_v35, 4  ;;  %v1501_v30 = vrot.slane %v1500_v10, 4  ;;  %v1591_v56 = vmul.f32 %v1477_v7, %v3536_v42  ;;  %v1592_v46 = vmul.f32 %v1478_v21, %v3536_v42  ;;  %v3538_v42 = vld [vmem:[#allocation31_spill] sm:$0xff] }
 0x472   : > { %v1517_v25 = vadd.f32 %v1516_v38, %v1513_v23  ;;  %v1526_v43 = vadd.f32 %v1525_v3, %v1514_v53  ;;  %v1570_v11 = vadd.f32 %v1569_v15, %v1565_v36  ;;  %v1579_v61 = vadd.f32 %v1578_v59, %v1566_v60 }
 0x473   : > { %v1493_v41 = vadd.f32 %v1492_v62, %v1491_v35  ;;  %v1502_v0 = vadd.f32 %v1501_v30, %v1500_v10  ;;  %v1593_v51 = vmul.f32 %v1479_v22, %v3537_v45  ;;  %v1594_v34 = vmul.f32 %v1480_v14, %v3537_v45 }
 0x474   : > { %v1518_v24 = vrot.slane %v1517_v25, 4  ;;  %v1527_v20 = vrot.slane %v1526_v43, 4  ;;  %v1571_v57 = vadd.f32 %v1570_v11, %v1567_v29  ;;  %v1580_v4 = vadd.f32 %v1579_v61, %v1568_v8 }
 0x475   : > { %v1494_v26 = vrot.slane %v1493_v41, 2  ;;  %v1503_v31 = vrot.slane %v1502_v0, 2  ;;  %v1595_v7 = vadd.f32 %v1589_v18, %v1587_v6  ;;  %v1604_v37 = vadd.f32 %v1590_v27, %v1588_v55 }
 0x476   : > { %v1519_v21 = vadd.f32 %v1518_v24, %v1517_v25  ;;  %v1528_v33 = vadd.f32 %v1527_v20, %v1526_v43  ;;  %v1572_v50 = vrot.slane %v1571_v57, 4  ;;  %v1581_v36 = vrot.slane %v1580_v4, 4 }
 0x477   : > { %v1495_v60 = vadd.f32 %v1494_v26, %v1493_v41  ;;  %v1504_v13 = vadd.f32 %v1503_v31, %v1502_v0  ;;  %v1596_v17 = vadd.f32 %v1595_v7, %v1591_v56  ;;  %v1605_v23 = vadd.f32 %v1604_v37, %v1592_v46  ;;  %v3539_v46 = vld [vmem:[#allocation32_spill] sm:$0xff] }
 0x478   : > { %v1520_v22 = vrot.slane %v1519_v21, 2  ;;  %v1529_v53 = vrot.slane %v1528_v33, 2  ;;  %v1573_v14 = vadd.f32 %v1572_v50, %v1571_v57  ;;  %v1582_v63 = vadd.f32 %v1581_v36, %v1580_v4 }
 0x479   : > { %v1496_v54 = vrot.slane %v1495_v60, 1  ;;  %v1505_v35 = vrot.slane %v1504_v13, 1  ;;  %v1597_v10 = vadd.f32 %v1596_v17, %v1593_v51  ;;  %v1606_v44 = vadd.f32 %v1605_v23, %v1594_v34 }
 0x47a   : > { %v1521_v29 = vadd.f32 %v1520_v22, %v1519_v21  ;;  %v1530_v8 = vadd.f32 %v1529_v53, %v1528_v33  ;;  %v1574_v6 = vrot.slane %v1573_v14, 2  ;;  %v1583_v55 = vrot.slane %v1582_v63, 2 }
 0x47b   : > { %v1497_v18 = vadd.f32 %v1496_v54, %v1495_v60  ;;  %v1506_v27 = vadd.f32 %v1505_v35, %v1504_v13  ;;  %v1598_v38 = vrot.slane %v1597_v10, 4  ;;  %v1607_v3 = vrot.slane %v1606_v44, 4 }
 0x47c   : > { %v1522_v15 = vrot.slane %v1521_v29, 1  ;;  %v1531_v59 = vrot.slane %v1530_v8, 1  ;;  %v1575_v62 = vadd.f32 %v1574_v6, %v1573_v14  ;;  %v1584_v30 = vadd.f32 %v1583_v55, %v1582_v63  ;;  %v1665_v14 = vpop.permute.xlu1 %1664  ;;  %v3542_v63 = vld [vmem:[#allocation57_spill] sm:$0xff] }
 0x47d   : > { %v1541_v56 = vmul.f32 %v3538_v42, %v1497_v18  ;;  %v1542_v25 = vmul.f32 %v3539_v46, %v1506_v27  ;;  %v1599_v43 = vadd.f32 %v1598_v38, %v1597_v10  ;;  %v1608_v11 = vadd.f32 %v1607_v3, %v1606_v44 }
 0x47e   : > { %v1523_v61 = vadd.f32 %v1522_v15, %v1521_v29  ;;  %v1532_v41 = vadd.f32 %v1531_v59, %v1530_v8  ;;  %v1576_v0 = vrot.slane %v1575_v62, 1  ;;  %v1585_v45 = vrot.slane %v1584_v30, 1 }
 0x47f   : > { %v1655_v51 = vsub.f32 %v3103_v9, %v3175_v2  ;;  %v1600_v34 = vrot.slane %v1599_v43, 2  ;;  %v1609_v24 = vrot.slane %v1608_v11, 2  ;;  %v1669_v20 = vsel %vm1668_vm8, %v1654_v1, %v1656_v5 }
 0x480   : > { %v1543_v57 = vadd.f32 %v1541_v56, %v1523_v61  ;;  %v1544_v4 = vadd.f32 %v1542_v25, %v1532_v41  ;;  %v1577_v26 = vadd.f32 %v1576_v0, %v1575_v62  ;;  %v1586_v31 = vadd.f32 %v1585_v45, %v1584_v30 }
 0x481   : > { %v1556_v7 = vrot.slane %v3183_v52, 6  ;;  %v1601_v37 = vadd.f32 %v1600_v34, %v1599_v43  ;;  %v1610_v21 = vadd.f32 %v1609_v24, %v1608_v11  ;;  %v1670_v9 = vsel %vm1668_vm8, %v1655_v51, %v1657_v47 }
 0x482   : > { %v1545_v33 = vsub.f32 %v3540_v49, %v1543_v57  ;;  %v1546_v50 = vsub.f32 %v3541_v48, %v1544_v4  ;;  %v1621_v1 = vmul.f32 %v3169_v58, %v1577_v26  ;;  %v1622_v5 = vmul.f32 %v3172_v32, %v1586_v31 }
 0x483   : > { %v1602_v36 = vrot.slane %v1601_v37, 1  ;;  %v1611_v60 = vrot.slane %v1610_v21, 1  ;;  %v1635_v35 = vrot.slane %v3199_v19, 6  ;;  %v1636_v10 = vrot.slane %v3205_v40, 6 }
 0x484   : > { %v1559_v52 = vmul.f32 %v1555_v12, %v1545_v33  ;;  %v1560_v13 = vmul.f32 %v1556_v7, %v1546_v50  ;;  %v1666_v8 = vrot.slane %v1665_v14, 4 }
 0x485   : > { %v1603_v16 = vadd.f32 %v1602_v36, %v1601_v37  ;;  %v1612_v17 = vadd.f32 %v1611_v60, %v1610_v21 }
 0x486   : > { %v1658_v47 = vsub.f32 %v1559_v52, %v3159_v39  ;;  %v1659_v23 = vsub.f32 %v1560_v13, %v3175_v2 }
 0x487   : > { %v1623_v22 = vadd.f32 %v1621_v1, %v1603_v16  ;;  %v1624_v58 = vadd.f32 %v1622_v5, %v1612_v17 }
 0x488   : > { %v1672_v32 = vsel %vm1671_vm9, %v1669_v20, %v1658_v47  ;;  %v1673_v53 = vsel %vm1671_vm9, %v1670_v9, %v1659_v23 }
 0x489   : > { %v1625_v54 = vsub.f32 %v3542_v63, %v1623_v22  ;;  %v1626_v12 = vsub.f32 %v3543_v28, %v1624_v58 }
 0x48b   : > { %v1639_v44 = vmul.f32 %v1635_v35, %v1625_v54  ;;  %v1640_v29 = vmul.f32 %v1636_v10, %v1626_v12 }
 0x48d   : > { %v1660_v6 = vsub.f32 %v1639_v44, %v3159_v39  ;;  %v1661_v55 = vsub.f32 %v1640_v29, %v3175_v2 }
 0x48f   : > { %v1675_v19 = vsel %vm1674_vm10, %v1672_v32, %v1660_v6  ;;  %v1676_v40 = vsel %vm1674_vm10, %v1673_v53, %v1661_v55 }
 0x490   : > { %v1678_v18 = vsel %vm1677_vm11, %v1675_v19, %v1666_v8  ;;  %v1679_v27 = vsel %vm1677_vm11, %v1676_v40, %v1666_v8 }
 0x491   : > { %1680 = vst [vmem:[%s137_s13] sm:$0xff] %v1678_v18 }
 0x492   : > { %1681 = vst [vmem:[%s137_s13 + $0x8] sm:$0xff] %v1679_v27 }
 0x493   : > { %2034 = shalt.err (!%p2031_p3)
}
 0x494   : > { %1771 = dma.vmem_to_hbm [thread:$0]  (%p2150_p5), %s1697_s16, 256, %s1699_s17, %s1683_s21  }
 0x495 PF: > { %p1777_p4 = scmp.ge.s32.totalorder %s2069_s12, 2  ;;  %s1710_s29 = sand.u32 1, %s2057_s9  }
 0x496   : > { %s1711_s30 = scalar_lea.sflag [#allocation3], %s1710_s29 }
 0x497   : > { %p1774_p7 = pnand %p1777_p4, %p2154_p6 }
 0x499   : > { %p1775_p8 = pneg %p1774_p7 }
 0x49b   : > { %2052 = dma.done.wait (%p1775_p8), %s1711_s30, 256  }
 0x49c   : > { %2054 = vsyncadd (%p1775_p8), %s1711_s30, 4294967040  ;;  %p12_p9 = scmp.ge.s32.totalorder %s2137_s15, 4   ;;  %s3544_s9 = smov %s2061_s10 }
 0x49d   : > { %s3545_s10 = smov %s2065_s11  ;;  %s3546_s11 = smov %s2148_s18 }
 0x49e   : > { %s3547_s12 = smov %s2137_s15  ;;  %14 = sbr.rel (!%p12_p9) target bundleno = 3 (0x3), region = 63 }
 0x4a3   :  { %1717 = vsyncpa [#allocation3], 1 }
 0x4a4   :  { %1719 = vsyncpa [#allocation3 + $0x1], 1 }

</bundles_post_ra>
